<compile_context>
chip_gen: v7x
topology: tpu7x:2x2x1
jax: 0.10.0
libtpu: 0.0.40
codegen_flags: <defaults>
</compile_context>

<pallas_src>
import jax
import jax.numpy as jnp
from jax.experimental import pallas as pl
from jax.experimental.pallas import tpu as pltpu


LANE = 128
_VMEM_BUDGET = 40 * 1024 * 1024   # target working set (comfortably < v7x 64 MiB)
_VMEM_LIMIT = 48 * 1024 * 1024    # explicit scoped-VMEM limit for the call


def _round_up(n, m):
    return ((n + m - 1) // m) * m


# ----------------------------------------------------------------------------
# Kernel
# ----------------------------------------------------------------------------
def _merge_kernel(x_ref, wb_ref, bb_ref, wa_ref, ba_ref, o_ref):
    # x_ref : [TILE_B, IN]   (f32 batch tile, streamed)
    # wb_ref: [IN, MID]      (modelB weight, pre-transposed, compute dtype)
    # bb_ref: [1, MID]       (f32)
    # wa_ref: [MID, OUT_P]   (modelA weight, pre-transposed + lane-padded)
    # ba_ref: [1, OUT_P]     (f32)
    # o_ref : [TILE_B, OUT_P]
    x = x_ref[...].astype(wb_ref.dtype)          # in-kernel cast (VPU), no HBM pass

    # ---- modelB: Linear + ReLU (MXU matmul, f32 accumulate, f32 epilogue) ----
    h = jnp.dot(x, wb_ref[...], preferred_element_type=jnp.float32)
    h = jnp.maximum(h + bb_ref[...], 0.0)

    # ---- modelA: Linear ------------------------------------------------------
    # NOTE: for MID >~ 512 with large batch tiles, chunk this matmul over MID
    # (fori_loop accumulating y) to bound vreg pressure; unnecessary here.
    y = jnp.dot(h.astype(wa_ref.dtype), wa_ref[...],
                preferred_element_type=jnp.float32)

    o_ref[...] = (y + ba_ref[...]).astype(o_ref.dtype)


# ----------------------------------------------------------------------------
# One-time parameter preparation (kept OUT of the per-call forward path)
# ----------------------------------------------------------------------------
def init_merged_params(wb, bb, wa, ba, compute_dtype=jnp.bfloat16, lane=LANE):
    """Pre-transpose / lane-pad / cast parameters once.

    wb: [MID, IN]  (PyTorch nn.Linear layout), bb: [MID]
    wa: [OUT, MID] (PyTorch nn.Linear layout), ba: [OUT]
    """
    MID, IN = wb.shape
    OUT = wa.shape[0]
    OUT_P = _round_up(OUT, lane)                 # lane-dense output width

    wb_t = jnp.asarray(wb.T, dtype=compute_dtype)            # [IN, MID]
    wa_t = jnp.asarray(wa.T, dtype=compute_dtype)            # [MID, OUT]
    if OUT_P != OUT:
        wa_t = jnp.pad(wa_t, ((0, 0), (0, OUT_P - OUT)))     # [MID, OUT_P]
    ba_p = jnp.pad(jnp.asarray(ba, jnp.float32), (0, OUT_P - OUT))

    return {
        "wb_t": wb_t,                                        # [IN, MID]
        "bb": jnp.asarray(bb, jnp.float32).reshape(1, MID),  # [1, MID] f32
        "wa_t": wa_t,                                        # [MID, OUT_P]
        "ba": ba_p.reshape(1, OUT_P),                        # [1, OUT_P] f32
        "out_dim": OUT,
    }


# ----------------------------------------------------------------------------
# VMEM budgeting / tile selection
# ----------------------------------------------------------------------------
def _vmem_bytes(tile_b, IN, MID, OUT_P, x_item, w_item, weight_bufs):
    weights = weight_bufs * ((IN * MID + MID * OUT_P) * w_item
                             + (MID + OUT_P) * 4)
    streams = 2 * tile_b * IN * x_item + 2 * tile_b * OUT_P * 4
    live = tile_b * (MID + OUT_P) * 4            # h + y intermediates (rough)
    return weights + streams + live


def _pick_tile_b(tile_b, B, IN, MID, OUT_P, x_item, w_item):
    tile_b = max(8, (tile_b // 8) * 8)
    # Budget with conservative weight_bufs=2 (covers the double-buffer fallback).
    while tile_b > 64 and _vmem_bytes(tile_b, IN, MID, OUT_P,
                                      x_item, w_item, 2) > _VMEM_BUDGET:
        tile_b //= 2
    if tile_b >= B:
        return B            # single block covering the full (possibly odd) batch
    return tile_b


# ----------------------------------------------------------------------------
# pallas_call builder
# ----------------------------------------------------------------------------
def _build_call(B, IN, MID, OUT_P, tile_b, x_dtype, w_dtype, out_dtype,
                single_buffer_weights):
    grid = (pl.cdiv(B, tile_b),)     # ragged last block handled by Pallas

    def const_spec(shape):
        # Constant block index -> fetched once, VMEM-resident across the grid.
        if single_buffer_weights:
            return pl.BlockSpec(shape, lambda i: (0, 0),
                                pipeline_mode=pl.Buffered(1))
        return pl.BlockSpec(shape, lambda i: (0, 0))

    x_item = jnp.dtype(x_dtype).itemsize
    w_item = jnp.dtype(w_dtype).itemsize
    o_item = jnp.dtype(out_dtype).itemsize
    cost = pl.CostEstimate(
        flops=2 * B * IN * MID + 2 * B * MID * OUT_P,
        transcendentals=0,
        bytes_accessed=(B * IN * x_item
                        + (IN * MID + MID * OUT_P) * w_item
                        + (MID + OUT_P) * 4
                        + B * OUT_P * o_item),
    )

    return pl.pallas_call(
        _merge_kernel,
        out_shape=jax.ShapeDtypeStruct((B, OUT_P), out_dtype),
        grid_spec=pltpu.PrefetchScalarGridSpec(
            num_scalar_prefetch=0,
            grid=grid,
            in_specs=[
                pl.BlockSpec((tile_b, IN), lambda i: (i, 0)),   # x stream
                const_spec((IN, MID)),                          # Wb^T
                const_spec((1, MID)),                           # bb
                const_spec((MID, OUT_P)),                       # Wa^T
                const_spec((1, OUT_P)),                         # ba
            ],
            out_specs=pl.BlockSpec((tile_b, OUT_P), lambda i: (i, 0)),
        ),
        compiler_params=pltpu.CompilerParams(
            dimension_semantics=("parallel",),     # batch axis -> both TCs (v7x)
            vmem_limit_bytes=_VMEM_LIMIT,
        ),
        cost_estimate=cost,
    )


# ----------------------------------------------------------------------------
# Forward
# ----------------------------------------------------------------------------
def merge_models_forward(x, params, tile_b=256, out_dtype=jnp.float32):
    """Fused forward: modelA(modelB(x)).   x: [B, IN] (f32, fed untouched)."""
    B, IN = x.shape
    wb_t, bb = params["wb_t"], params["bb"]
    wa_t, ba = params["wa_t"], params["ba"]
    MID, OUT_P = wa_t.shape
    OUT = params["out_dim"]

    tile = _pick_tile_b(tile_b, B, IN, MID, OUT_P,
                        jnp.dtype(x.dtype).itemsize,
                        jnp.dtype(wb_t.dtype).itemsize)

    args = (x, wb_t, bb, wa_t, ba)
    try:
        out_p = _build_call(B, IN, MID, OUT_P, tile, x.dtype, wb_t.dtype,
                            out_dtype, single_buffer_weights=True)(*args)
    except Exception:
        # Fallback if this JAX build rejects pl.Buffered(1) single-buffering.
        out_p = _build_call(B, IN, MID, OUT_P, tile, x.dtype, wb_t.dtype,
                            out_dtype, single_buffer_weights=False)(*args)

    if OUT_P == OUT:
        return out_p
    # Cheap lane-strip; fuse into the consumer if it accepts [B, OUT_P].
    return out_p[:, :OUT]


# ----------------------------------------------------------------------------
# Reference + demo
# ----------------------------------------------------------------------------
def _reference(x, wb, bb, wa, ba):
    h = jnp.maximum(x @ wb.T + bb, 0.0)   # modelB: Linear + ReLU
    return h @ wa.T + ba                  # modelA: Linear


if __name__ == "__main__":
    key = jax.random.PRNGKey(0)
    k_x, k_wb, k_bb, k_wa, k_ba = jax.random.split(key, 5)

    # Small shapes that still exercise the batch grid (4 tiles of 256 rows).
    B, IN, MID, OUT = 1024, 64, 128, 32

    x = jax.random.normal(k_x, (B, IN), dtype=jnp.float32)
    # Synthetic sub-model parameters (nn.Linear layout: (out_features, in_features)).
    wb = jax.random.normal(k_wb, (MID, IN), dtype=jnp.float32) * 0.1
    bb = jax.random.normal(k_bb, (MID,), dtype=jnp.float32) * 0.1
    wa = jax.random.normal(k_wa, (OUT, MID), dtype=jnp.float32) * 0.1
    ba = jax.random.normal(k_ba, (OUT,), dtype=jnp.float32) * 0.1

    ref = _reference(x, wb, bb, wa, ba)

    # ---- f32 compute path: matches reference closely -----------------------
    params_f32 = init_merged_params(wb, bb, wa, ba, compute_dtype=jnp.float32)
    out_f32 = jax.block_until_ready(merge_models_forward(x, params_f32))
    assert out_f32.shape == (B, OUT)
    assert jnp.allclose(out_f32, ref, atol=1e-4, rtol=1e-4), "f32 mismatch vs reference"

    # ---- bf16 compute path (default; MXU-native), f32 accumulation ---------
    params_bf16 = init_merged_params(wb, bb, wa, ba)          # bf16 by default
    out_bf16 = jax.block_until_ready(merge_models_forward(x, params_bf16))
    assert out_bf16.shape == (B, OUT)
    assert float(jnp.max(jnp.abs(out_bf16 - ref))) < 0.15, "bf16 path diverged"

    # ---- ragged batch: last grid block is partial (B=1000, tile=256) -------
    B_r = 1000
    x_r = x[:B_r]
    out_r = jax.block_until_ready(merge_models_forward(x_r, params_bf16))
    assert out_r.shape == (B_r, OUT)
    assert float(jnp.max(jnp.abs(out_r - ref[:B_r]))) < 0.15, "ragged-batch path diverged"

    print("KERNEL_OK")
</pallas_src>

<mosaic_0001>
module attributes {stable_mosaic.version = 11 : i64} {
  func.func @_merge_kernel(%arg0: i32, %arg1: memref<256x64xf32, #tpu.memory_space<vmem>>, %arg2: memref<64x128xf32, #tpu.memory_space<vmem>>, %arg3: memref<1x128xf32, #tpu.memory_space<vmem>>, %arg4: memref<128x128xf32, #tpu.memory_space<vmem>>, %arg5: memref<1x128xf32, #tpu.memory_space<vmem>>, %arg6: memref<256x128xf32, #tpu.memory_space<vmem>>) attributes {dimension_semantics = [#tpu.dimension_semantics<parallel>], iteration_bounds = array<i64: 4>, scalar_prefetch = 0 : i64, scratch_operands = 0 : i64, tpu.core_type = #tpu.core_type<tc>, window_params = [{transform_indices = @transform_0, window_bounds = array<i64: 256, 64>}, {pipeline_mode = #tpu.pipeline_mode<synchronous>, transform_indices = @transform_1, window_bounds = array<i64: 64, 128>}, {pipeline_mode = #tpu.pipeline_mode<synchronous>, transform_indices = @transform_2, window_bounds = array<i64: 1, 128>}, {pipeline_mode = #tpu.pipeline_mode<synchronous>, transform_indices = @transform_3, window_bounds = array<i64: 128, 128>}, {pipeline_mode = #tpu.pipeline_mode<synchronous>, transform_indices = @transform_4, window_bounds = array<i64: 1, 128>}, {transform_indices = @transform_5, window_bounds = array<i64: 256, 128>}]} {
    %c0 = arith.constant 0 : index
    %c0_0 = arith.constant 0 : index
    %0 = vector.load %arg1[%c0, %c0_0] : memref<256x64xf32, #tpu.memory_space<vmem>>, vector<256x64xf32>
    %c0_1 = arith.constant 0 : index
    %c0_2 = arith.constant 0 : index
    %1 = vector.load %arg2[%c0_1, %c0_2] : memref<64x128xf32, #tpu.memory_space<vmem>>, vector<64x128xf32>
    %cst = arith.constant dense<0.000000e+00> : vector<256x128xf32>
    %2 = tpu.matmul %0, %1, %cst {dimension_numbers = #tpu.dot_dimension_numbers<[1], [0], [0], [1], [0, 0, 1, 1], [], []>} : vector<256x64xf32>, vector<64x128xf32>, vector<256x128xf32> -> vector<256x128xf32>
    %c0_3 = arith.constant 0 : index
    %c0_4 = arith.constant 0 : index
    %3 = vector.load %arg3[%c0_3, %c0_4] : memref<1x128xf32, #tpu.memory_space<vmem>>, vector<1x128xf32>
    %4 = vector.broadcast %3 : vector<1x128xf32> to vector<256x128xf32>
    %5 = arith.addf %2, %4 : vector<256x128xf32>
    %cst_5 = arith.constant 0.000000e+00 : f32
    %6 = vector.broadcast %cst_5 : f32 to vector<256x128xf32>
    %7 = arith.maximumf %5, %6 : vector<256x128xf32>
    %c0_6 = arith.constant 0 : index
    %c0_7 = arith.constant 0 : index
    %8 = vector.load %arg4[%c0_6, %c0_7] : memref<128x128xf32, #tpu.memory_space<vmem>>, vector<128x128xf32>
    %cst_8 = arith.constant dense<0.000000e+00> : vector<256x128xf32>
    %9 = tpu.matmul %7, %8, %cst_8 {dimension_numbers = #tpu.dot_dimension_numbers<[1], [0], [0], [1], [0, 0, 1, 1], [], []>} : vector<256x128xf32>, vector<128x128xf32>, vector<256x128xf32> -> vector<256x128xf32>
    %c0_9 = arith.constant 0 : index
    %c0_10 = arith.constant 0 : index
    %10 = vector.load %arg5[%c0_9, %c0_10] : memref<1x128xf32, #tpu.memory_space<vmem>>, vector<1x128xf32>
    %11 = vector.broadcast %10 : vector<1x128xf32> to vector<256x128xf32>
    %12 = arith.addf %9, %11 : vector<256x128xf32>
    %c0_11 = arith.constant 0 : index
    %c0_12 = arith.constant 0 : index
    %13 = vector.load %arg6[%c0_11, %c0_12] : memref<256x128xf32, #tpu.memory_space<vmem>>, vector<256x128xf32>
    tpu.vector_store %arg6[%c0_11, %c0_12], %12 {strides = array<i32>} : memref<256x128xf32, #tpu.memory_space<vmem>>, vector<256x128xf32>,
    return
  }
  func.func @transform_0(%arg0: i32) -> (i32, i32) {
    %c0_i32 = arith.constant 0 : i32
    %c0_i32_0 = arith.constant 0 : i32
    return %arg0, %c0_i32 : i32, i32
  }
  func.func @transform_1(%arg0: i32) -> (i32, i32) {
    %c0_i32 = arith.constant 0 : i32
    %c0_i32_0 = arith.constant 0 : i32
    %c0_i32_1 = arith.constant 0 : i32
    return %c0_i32, %c0_i32_0 : i32, i32
  }
  func.func @transform_2(%arg0: i32) -> (i32, i32) {
    %c0_i32 = arith.constant 0 : i32
    %c0_i32_0 = arith.constant 0 : i32
    %c0_i32_1 = arith.constant 0 : i32
    return %c0_i32, %c0_i32_0 : i32, i32
  }
  func.func @transform_3(%arg0: i32) -> (i32, i32) {
    %c0_i32 = arith.constant 0 : i32
    %c0_i32_0 = arith.constant 0 : i32
    %c0_i32_1 = arith.constant 0 : i32
    return %c0_i32, %c0_i32_0 : i32, i32
  }
  func.func @transform_4(%arg0: i32) -> (i32, i32) {
    %c0_i32 = arith.constant 0 : i32
    %c0_i32_0 = arith.constant 0 : i32
    %c0_i32_1 = arith.constant 0 : i32
    return %c0_i32, %c0_i32_0 : i32, i32
  }
  func.func @transform_5(%arg0: i32) -> (i32, i32) {
    %c0_i32 = arith.constant 0 : i32
    %c0_i32_0 = arith.constant 0 : i32
    return %arg0, %c0_i32 : i32, i32
  }
}

module attributes {stable_mosaic.version = 11 : i64} {
  func.func @_merge_kernel(%arg0: i32, %arg1: memref<256x64xf32, #tpu.memory_space<vmem>>, %arg2: memref<64x128xf32, #tpu.memory_space<vmem>>, %arg3: memref<1x128xf32, #tpu.memory_space<vmem>>, %arg4: memref<128x128xf32, #tpu.memory_space<vmem>>, %arg5: memref<1x128xf32, #tpu.memory_space<vmem>>, %arg6: memref<256x128xf32, #tpu.memory_space<vmem>>) attributes {dimension_semantics = [#tpu.dimension_semantics<parallel>], iteration_bounds = array<i64: 4>, scalar_prefetch = 0 : i64, scratch_operands = 0 : i64, tpu.core_type = #tpu.core_type<tc>, window_params = [{transform_indices = @transform_0, window_bounds = array<i64: 256, 64>}, {pipeline_mode = #tpu.pipeline_mode<synchronous>, transform_indices = @transform_1, window_bounds = array<i64: 64, 128>}, {pipeline_mode = #tpu.pipeline_mode<synchronous>, transform_indices = @transform_2, window_bounds = array<i64: 1, 128>}, {pipeline_mode = #tpu.pipeline_mode<synchronous>, transform_indices = @transform_3, window_bounds = array<i64: 128, 128>}, {pipeline_mode = #tpu.pipeline_mode<synchronous>, transform_indices = @transform_4, window_bounds = array<i64: 1, 128>}, {transform_indices = @transform_5, window_bounds = array<i64: 256, 128>}]} {
    %c0 = arith.constant 0 : index
    %c0_0 = arith.constant 0 : index
    %0 = vector.load %arg1[%c0, %c0_0] : memref<256x64xf32, #tpu.memory_space<vmem>>, vector<256x64xf32>
    %c0_1 = arith.constant 0 : index
    %c0_2 = arith.constant 0 : index
    %1 = vector.load %arg2[%c0_1, %c0_2] : memref<64x128xf32, #tpu.memory_space<vmem>>, vector<64x128xf32>
    %cst = arith.constant dense<0.000000e+00> : vector<256x128xf32>
    %2 = tpu.matmul %0, %1, %cst {dimension_numbers = #tpu.dot_dimension_numbers<[1], [0], [0], [1], [0, 0, 1, 1], [], []>} : vector<256x64xf32>, vector<64x128xf32>, vector<256x128xf32> -> vector<256x128xf32>
    %c0_3 = arith.constant 0 : index
    %c0_4 = arith.constant 0 : index
    %3 = vector.load %arg3[%c0_3, %c0_4] : memref<1x128xf32, #tpu.memory_space<vmem>>, vector<1x128xf32>
    %4 = vector.broadcast %3 : vector<1x128xf32> to vector<256x128xf32>
    %5 = arith.addf %2, %4 : vector<256x128xf32>
    %cst_5 = arith.constant 0.000000e+00 : f32
    %6 = vector.broadcast %cst_5 : f32 to vector<256x128xf32>
    %7 = arith.maximumf %5, %6 : vector<256x128xf32>
    %c0_6 = arith.constant 0 : index
    %c0_7 = arith.constant 0 : index
    %8 = vector.load %arg4[%c0_6, %c0_7] : memref<128x128xf32, #tpu.memory_space<vmem>>, vector<128x128xf32>
    %cst_8 = arith.constant dense<0.000000e+00> : vector<256x128xf32>
    %9 = tpu.matmul %7, %8, %cst_8 {dimension_numbers = #tpu.dot_dimension_numbers<[1], [0], [0], [1], [0, 0, 1, 1], [], []>} : vector<256x128xf32>, vector<128x128xf32>, vector<256x128xf32> -> vector<256x128xf32>
    %c0_9 = arith.constant 0 : index
    %c0_10 = arith.constant 0 : index
    %10 = vector.load %arg5[%c0_9, %c0_10] : memref<1x128xf32, #tpu.memory_space<vmem>>, vector<1x128xf32>
    %11 = vector.broadcast %10 : vector<1x128xf32> to vector<256x128xf32>
    %12 = arith.addf %9, %11 : vector<256x128xf32>
    %c0_11 = arith.constant 0 : index
    %c0_12 = arith.constant 0 : index
    %13 = vector.load %arg6[%c0_11, %c0_12] : memref<256x128xf32, #tpu.memory_space<vmem>>, vector<256x128xf32>
    tpu.vector_store %arg6[%c0_11, %c0_12], %12 {strides = array<i32>} : memref<256x128xf32, #tpu.memory_space<vmem>>, vector<256x128xf32>,
    return
  }
  func.func @transform_0(%arg0: i32) -> (i32, i32) {
    %c0_i32 = arith.constant 0 : i32
    %c0_i32_0 = arith.constant 0 : i32
    return %arg0, %c0_i32 : i32, i32
  }
  func.func @transform_1(%arg0: i32) -> (i32, i32) {
    %c0_i32 = arith.constant 0 : i32
    %c0_i32_0 = arith.constant 0 : i32
    %c0_i32_1 = arith.constant 0 : i32
    return %c0_i32, %c0_i32_0 : i32, i32
  }
  func.func @transform_2(%arg0: i32) -> (i32, i32) {
    %c0_i32 = arith.constant 0 : i32
    %c0_i32_0 = arith.constant 0 : i32
    %c0_i32_1 = arith.constant 0 : i32
    return %c0_i32, %c0_i32_0 : i32, i32
  }
  func.func @transform_3(%arg0: i32) -> (i32, i32) {
    %c0_i32 = arith.constant 0 : i32
    %c0_i32_0 = arith.constant 0 : i32
    %c0_i32_1 = arith.constant 0 : i32
    return %c0_i32, %c0_i32_0 : i32, i32
  }
  func.func @transform_4(%arg0: i32) -> (i32, i32) {
    %c0_i32 = arith.constant 0 : i32
    %c0_i32_0 = arith.constant 0 : i32
    %c0_i32_1 = arith.constant 0 : i32
    return %c0_i32, %c0_i32_0 : i32, i32
  }
  func.func @transform_5(%arg0: i32) -> (i32, i32) {
    %c0_i32 = arith.constant 0 : i32
    %c0_i32_0 = arith.constant 0 : i32
    return %arg0, %c0_i32 : i32, i32
  }
}

</mosaic_0001>

<bundles_post_ra>
// kernel: tpu_custom_call.1
= control target key start
LH: loop header
LB: loop body
LE: loop exit
PB: predicated region body
PF: predicated region fallthrough
CT: control target
= control target key end

     0   :  { %10 = vsyncpa [#allocation3], 0  ;;  %s1817_s0 = inlined_call_operand.vmem [shape: f32[1024,64], index: 0, kind: input, shape index: {}]   ;;  %s1818_s1 = inlined_call_operand.vmem [shape: f32[64,128], index: 1, kind: input, shape index: {}]   ;;  %s1819_s2 = inlined_call_operand.vmem [shape: f32[1,128], index: 2, kind: input, shape index: {}]   ;;  %s1820_s3 = inlined_call_operand.vmem [shape: f32[128,128], index: 3, kind: input, shape index: {}]   ;;  %s1821_s4 = inlined_call_operand.vmem [shape: f32[1,128], index: 4, kind: input, shape index: {}]   ;;  %s1822_s5 = inlined_call_operand.hbm [shape: f32[1024,128], index: 5, kind: output, shape index: {}]  }
   0x1   :  { %12 = vsyncpa [#allocation3 + $0x1], 0  ;;  %s1464_s18 = smov 0   ;;  %s1466_s19 = smov 0  }
   0x2   :  { %s1468_s20 = smov 0   ;;  %s1470_s21 = smov 0  }
   0x3 LB: > { %s1485_s22 = sadd.s32 4294967295, %s1429_s21   ;;  %s983_s23 = sadd.s32 4294967294, %s1429_s21   ;;  %s1429_s21 = sphi %s1470_s21, %s1828_s21   ;;  %s1425_s20 = sphi %s1468_s20, %s1827_s20   ;;  %s1421_s19 = sphi %s1466_s19, %s1826_s19   ;;  %s1417_s18 = sphi %s1464_s18, %s1825_s18  }
   0x4   : > { %s1489_s24 = sadd.s32 1, %s1429_s21   ;;  %s135_s25 = sadd.s32 1, %s1425_s20 }
   0x5   : > { %s132_s26 = ssub.s32 %s1429_s21, %s1489_s24  ;;  %p145_p0 = scmp.ne.s32.totalorder %s1425_s20, %s1421_s19 }
   0x6   : > { %p133_p1 = scmp.eq.s32.totalorder %s132_s26, 0  ;;  %p146_p2 = scmp.eq.s32.totalorder %s1485_s22, 3 }
   0x7   : > { %p151_p3 = scmp.ne.s32.totalorder %s1421_s19, %s1417_s18  ;;  %p152_p4 = scmp.eq.s32.totalorder %s983_s23, 3 }
   0x8   : > { %s1500_s27 = scalar_select %p133_p1, %s1425_s20, %s135_s25  }
   0x9   : > { %p1502_p5 = por %p146_p2, %p145_p0  ;;  %p1506_p6 = por %p152_p4, %p151_p3 }
   0xa   : > { %p986_p7 = scmp.ge.s32.totalorder %s1429_s21, 1  ;;  %p191_p8 = scmp.lt.s32.totalorder %s1429_s21, 5 }
   0xc   : > { %p192_p9 = pnand %p986_p7, %p191_p8 }
   0xd   : > { %v258_v0 = vld [vmem:[%s1818_s1] sm:$0xff] (!%p192_p9)  ;;  %v259_v1 = vld [vmem:[%s1818_s1 + $0x8] sm:$0xff] (!%p192_p9)  ;;  %v260_v2 = vld [vmem:[%s1818_s1 + $0x10] sm:$0xff] (!%p192_p9)  ;;  %s988_s11 = sshll.u32 (!%p192_p9), %s1485_s22, 5  ;;  %vm273_vm0 = vcmask (!%p192_p9), 523264   ;;  %s1029_s25 = sshll.u32 (!%p192_p9), %s1485_s22, 12 }
   0xe   : > { %195 = sbr.rel (%p192_p9) target bundleno = 540 (0x21c), region = 40  ;;  %v1262_v3 = vpack.c.bf16 (!%p192_p9), %v259_v1, %v258_v0  ;;  %v261_v4 = vld [vmem:[%s1818_s1 + $0x18] sm:$0xff] (!%p192_p9)  ;;  %p220_p10 = scmp.lt.s32.totalorder (!%p192_p9), %s988_s11, 127  ;;  %v262_v6 = vld [vmem:[%s1818_s1 + $0x20] sm:$0xff] (!%p192_p9)  ;;  %v263_v7 = vld [vmem:[%s1818_s1 + $0x28] sm:$0xff] (!%p192_p9) }
   0xf   : > { %v1266_v5 = vpack.c.bf16 (!%p192_p9), %v261_v4, %v260_v2  ;;  %v627_v8 = vld [vmem:[%s1820_s3] sm:$0xff] (!%p192_p9)  ;;  %v628_v9 = vld [vmem:[%s1820_s3 + $0x8] sm:$0xff] (!%p192_p9)  ;;  %v629_v11 = vld [vmem:[%s1820_s3 + $0x10] sm:$0xff] (!%p192_p9)  ;;  %v1270_v13 = vpack.c.bf16 (!%p192_p9), %v263_v7, %v262_v6  ;;  %s1767_s6 = scalar_lea.hbm (!%p192_p9), %s1822_s5, %s1029_s25  ;;  %s1431_s8 = smov (!%p192_p9), [#allocation2]  }
  0x10   : > { %1263 = vmatprep.subr.bf16.mxu0 (!%p192_p9), %v1262_v3  ;;  %v1278_v10 = vpack.c.bf16 (!%p192_p9), %v628_v9, %v627_v8  ;;  %v630_v12 = vld [vmem:[%s1820_s3 + $0x18] sm:$0xff] (!%p192_p9)  ;;  %v264_v14 = vld [vmem:[%s1818_s1 + $0x30] sm:$0xff] (!%p192_p9)  ;;  %v631_v18 = vld [vmem:[%s1820_s3 + $0x20] sm:$0xff] (!%p192_p9)  ;;  %s1371_s9 = sshll.u32 (!%p192_p9), %s1431_s8, 4  ;;  %s1372_s9 = int_to_ptr.vmem [resolvable:$false] %s1371_s9 }
  0x11   : > { %1265 = vmatpush3.bf16.msra.mxu0 (!%p192_p9), %v1262_v3  ;;  %v265_v15 = vld [vmem:[%s1818_s1 + $0x38] sm:$0xff] (!%p192_p9)  ;;  %v1282_v17 = vpack.c.bf16 (!%p192_p9), %v630_v12, %v629_v11  ;;  %v632_v19 = vld [vmem:[%s1820_s3 + $0x28] sm:$0xff] (!%p192_p9)  ;;  %v633_v22 = vld [vmem:[%s1820_s3 + $0x30] sm:$0xff] (!%p192_p9) }
  0x12   : > { %1267 = vmatprep.subr.bf16.mxu0 (!%p192_p9), %v1266_v5  ;;  %1310 = vmatprep.subr.bf16.mxu1 (!%p192_p9), %v1278_v10  ;;  %v1274_v20 = vpack.c.bf16 (!%p192_p9), %v265_v15, %v264_v14  ;;  %v1286_v21 = vpack.c.bf16 (!%p192_p9), %v632_v19, %v631_v18  ;;  %v634_v23 = vld [vmem:[%s1820_s3 + $0x38] sm:$0xff] (!%p192_p9)  ;;  %v635_v26 = vld [vmem:[%s1820_s3 + $0x40] sm:$0xff] (!%p192_p9)  ;;  %v636_v27 = vld [vmem:[%s1820_s3 + $0x48] sm:$0xff] (!%p192_p9) }
  0x13   : > { %1318 = vmatpush3.bf16.msra.mxu1 (!%p192_p9), %v1278_v10  ;;  %v1290_v24 = vpack.c.bf16 (!%p192_p9), %v634_v23, %v633_v22  ;;  %v1294_v29 = vpack.c.bf16 (!%p192_p9), %v636_v27, %v635_v26  ;;  %v637_v31 = vld [vmem:[%s1820_s3 + $0x50] sm:$0xff] (!%p192_p9)  ;;  %v638_v32 = vld [vmem:[%s1820_s3 + $0x58] sm:$0xff] (!%p192_p9)  ;;  %v639_v36 = vld [vmem:[%s1820_s3 + $0x60] sm:$0xff] (!%p192_p9) }
  0x14   : > { %1311 = vmatprep.subr.bf16.mxu1 (!%p192_p9), %v1282_v17  ;;  %v1298_v34 = vpack.c.bf16 (!%p192_p9), %v638_v32, %v637_v31  ;;  %v640_v37 = vld [vmem:[%s1820_s3 + $0x68] sm:$0xff] (!%p192_p9)  ;;  %v641_v1 = vld [vmem:[%s1820_s3 + $0x70] sm:$0xff] (!%p192_p9)  ;;  %v642_v2 = vld [vmem:[%s1820_s3 + $0x78] sm:$0xff] (!%p192_p9) }
  0x15   : > { %s1830_s11 = smov (!%p220_p10, %s988_s11), 127  ;;  %1269 = vmatpush3.bf16.msra.mxu0 %v1266_v5  ;;  %v1302_v39 = vpack.c.bf16 %v640_v37, %v639_v36  ;;  %v1306_v3 = vpack.c.bf16 %v642_v2, %v641_v1  ;;  %v1657_v4 = vld [vmem:[%s1819_s2] ss:$0 sm:$0xff] }
  0x16   : > { %s989_s10 = sshll.u32 %s1830_s11, 3  ;;  %1271 = vmatprep.subr.bf16.mxu0 %v1270_v13 }
  0x17   : > { %s1552_s23 = scalar_lea.vmem %s1817_s0, %s989_s10  ;;  %1319 = vmatpush3.bf16.msra.mxu1 %v1282_v17  ;;  %s1373_s10 = scalar_lea.vmem %s1372_s9, 8192 }
  0x18   : > { %v226_v16 = vld [vmem:[%s1552_s23] sm:$0xff]  ;;  %1312 = vmatprep.subr.bf16.mxu1 %v1286_v21  ;;  %v227_v25 = vld [vmem:[%s1552_s23 + $0x8] sm:$0xff]  ;;  %v228_v28 = vld [vmem:[%s1552_s23 + $0x10] sm:$0xff] }
  0x19   : > { %1134 = vmatprep.mubr.msk.f32.mxu0 %vm273_vm0, %v226_v16  ;;  %1273 = vmatpush3.bf16.msra.mxu0 %v1270_v13  ;;  %v229_v30 = vld [vmem:[%s1552_s23 + $0x18] sm:$0xff]  ;;  %v230_v33 = vld [vmem:[%s1552_s23 + $0x20] sm:$0xff]  ;;  %v231_v35 = vld [vmem:[%s1552_s23 + $0x28] sm:$0xff] }
  0x1a   : > { %1275 = vmatprep.subr.bf16.mxu0 %v1274_v20  ;;  %v232_v38 = vld [vmem:[%s1552_s23 + $0x30] sm:$0xff]  ;;  %v233_v40 = vld [vmem:[%s1552_s23 + $0x38] sm:$0xff]  ;;  %v234_v41 = vld [vmem:[%s1552_s23 + $0x40] sm:$0xff] }
  0x1b   : > { %1320 = vmatpush3.bf16.msra.mxu1 %v1286_v21  ;;  %v235_v42 = vld [vmem:[%s1552_s23 + $0x48] sm:$0xff]  ;;  %v236_v43 = vld [vmem:[%s1552_s23 + $0x50] sm:$0xff]  ;;  %v237_v44 = vld [vmem:[%s1552_s23 + $0x58] sm:$0xff] }
  0x1c   : > { %1313 = vmatprep.subr.bf16.mxu1 %v1290_v24  ;;  %v238_v45 = vld [vmem:[%s1552_s23 + $0x60] sm:$0xff]  ;;  %v239_v46 = vld [vmem:[%s1552_s23 + $0x68] sm:$0xff]  ;;  %v240_v47 = vld [vmem:[%s1552_s23 + $0x70] sm:$0xff] }
  0x1d   : > { %1277 = vmatpush3.bf16.msra.mxu0 %v1274_v20  ;;  %v241_v48 = vld [vmem:[%s1552_s23 + $0x78] sm:$0xff]  ;;  %v242_v49 = vld [vmem:[%s1552_s23 + $0x80] sm:$0xff]  ;;  %v243_v50 = vld [vmem:[%s1552_s23 + $0x88] sm:$0xff] }
  0x1e   : > { %1279 = vmatprep.subr.bf16.mxu0 %v1278_v10  ;;  %v244_v51 = vld [vmem:[%s1552_s23 + $0x90] sm:$0xff]  ;;  %v245_v52 = vld [vmem:[%s1552_s23 + $0x98] sm:$0xff]  ;;  %v246_v53 = vld [vmem:[%s1552_s23 + $0xa0] sm:$0xff] }
  0x1f   : > { %1321 = vmatpush3.bf16.msra.mxu1 %v1290_v24  ;;  %v247_v54 = vld [vmem:[%s1552_s23 + $0xa8] sm:$0xff]  ;;  %v248_v55 = vld [vmem:[%s1552_s23 + $0xb0] sm:$0xff]  ;;  %v249_v56 = vld [vmem:[%s1552_s23 + $0xb8] sm:$0xff] }
  0x20   : > { %1135 = vmatmul.mubr.msk.f32.vlgmr.msra.gmra.mrb[0].mxu0 %vm273_vm0, %v227_v25  ;;  %1314 = vmatprep.subr.bf16.mxu1 %v1294_v29  ;;  %v250_v57 = vld [vmem:[%s1552_s23 + $0xc0] sm:$0xff]  ;;  %v251_v58 = vld [vmem:[%s1552_s23 + $0xc8] sm:$0xff]  ;;  %v252_v59 = vld [vmem:[%s1552_s23 + $0xd0] sm:$0xff] }
  0x21   : > { %1137 = vmatprep.mubr.msk.f32.mxu0 %vm273_vm0, %v228_v28  ;;  %1281 = vmatpush3.bf16.msra.mxu0 %v1278_v10  ;;  %v253_v60 = vld [vmem:[%s1552_s23 + $0xd8] sm:$0xff]  ;;  %v254_v61 = vld [vmem:[%s1552_s23 + $0xe0] sm:$0xff]  ;;  %v255_v62 = vld [vmem:[%s1552_s23 + $0xe8] sm:$0xff] }
  0x22   : > { %1283 = vmatprep.subr.bf16.mxu0 %v1282_v17  ;;  %v256_v63 = vld [vmem:[%s1552_s23 + $0xf0] sm:$0xff]  ;;  %v257_v0 = vld [vmem:[%s1552_s23 + $0xf8] sm:$0xff]  ;;  %s216_s23 = sand.u32 1, %s1421_s19  }
  0x23   : > { %1322 = vmatpush3.bf16.msra.mxu1 %v1294_v29  ;;  %s987_s14 = sshll.u32 %s216_s23, 8  ;;  %s1776_s22 = scalar_lea.sflag [#allocation3], %s216_s23 }
  0x24   : > { %1138 = vmatmul.mubr.msk.f32.gmra.mrb[2].mxu0 %vm273_vm0, %v229_v30  ;;  %1315 = vmatprep.subr.bf16.mxu1 %v1298_v34  ;;  %s1701_s17 = scalar_lea.vmem [#allocation2], %s987_s14 }
  0x25   : > { %1140 = vmatprep.mubr.msk.f32.mxu0 %vm273_vm0, %v230_v33  ;;  %1285 = vmatpush3.bf16.msra.mxu0 %v1282_v17  ;;  %s921_s11 = sshll.u32 %s1701_s17, 4  ;;  %s1769_s11 = int_to_ptr.vmem [resolvable:$true] %s921_s11 }
  0x26   : > { %1287 = vmatprep.subr.bf16.mxu0 %v1286_v21  ;;  %s1367_s7 = scalar_lea.vmem %s1769_s11, 4096  ;;  %p1374_p0 = scmp.lt.s32.totalorder %s1769_s11, %s1372_s9 }
  0x27   : > { %1323 = vmatpush3.bf16.msra.mxu1 %v1298_v34  ;;  %p1368_p11 = scmp.ne.s32.totalorder %s1769_s11, %s1367_s7  ;;  %p1375_p1 = scmp.lt.s32.totalorder %s1373_s10, %s1367_s7 }
  0x28   : > { %1141 = vmatmul.mubr.msk.f32.gmra.mrb[4].mxu0 %vm273_vm0, %v231_v35  ;;  %1316 = vmatprep.subr.bf16.mxu1 %v1302_v39 }
  0x29   : > { %1143 = vmatprep.mubr.msk.f32.mxu0 %vm273_vm0, %v232_v38  ;;  %1289 = vmatpush3.bf16.msra.mxu0 %v1286_v21  ;;  %p1369_p12 = pnand %p1368_p11, %p1502_p5  ;;  %p1376_p2 = por %p1375_p1, %p1374_p0 }
  0x2a   : > { %1291 = vmatprep.subr.bf16.mxu0 %v1290_v24 }
  0x2b   : > { %1324 = vmatpush3.bf16.msra.mxu1 %v1302_v39  ;;  %p1370_p13 = pneg %p1369_p12 }
  0x2c   : > { %1144 = vmatmul.mubr.msk.f32.gmra.mrb[6].mxu0 %vm273_vm0, %v233_v40  ;;  %1317 = vmatprep.subr.bf16.mxu1 %v1306_v3 }
  0x2d   : > { %1146 = vmatprep.mubr.msk.f32.mxu0 %vm273_vm0, %v234_v41  ;;  %1293 = vmatpush3.bf16.msra.mxu0 %v1290_v24  ;;  %p1377_p3 = pnand %p1376_p2, %p1370_p13 }
  0x2e   : > { %1295 = vmatprep.subr.bf16.mxu0 %v1294_v29 }
  0x2f   : > { %1325 = vmatpush3.bf16.msra.mxu1 %v1306_v3 }
  0x30   : > { %1147 = vmatmul.mubr.msk.f32.gmra.mrb[8].mxu0 %vm273_vm0, %v235_v42 }
  0x31   : > { %1149 = vmatprep.mubr.msk.f32.mxu0 %vm273_vm0, %v236_v43  ;;  %1297 = vmatpush3.bf16.msra.mxu0 %v1294_v29 }
  0x32   : > { %1299 = vmatprep.subr.bf16.mxu0 %v1298_v34 }
  0x34   : > { %1150 = vmatmul.mubr.msk.f32.gmra.mrb[10].mxu0 %vm273_vm0, %v237_v44 }
  0x35   : > { %1152 = vmatprep.mubr.msk.f32.mxu0 %vm273_vm0, %v238_v45  ;;  %1301 = vmatpush3.bf16.msra.mxu0 %v1298_v34 }
  0x36   : > { %1303 = vmatprep.subr.bf16.mxu0 %v1302_v39 }
  0x38   : > { %1153 = vmatmul.mubr.msk.f32.gmra.mrb[12].mxu0 %vm273_vm0, %v239_v46 }
  0x39   : > { %1155 = vmatprep.mubr.msk.f32.mxu0 %vm273_vm0, %v240_v47  ;;  %1305 = vmatpush3.bf16.msra.mxu0 %v1302_v39 }
  0x3a   : > { %1307 = vmatprep.subr.bf16.mxu0 %v1306_v3 }
  0x3c   : > { %1156 = vmatmul.mubr.msk.f32.gmra.mrb[14].mxu0 %vm273_vm0, %v241_v48 }
  0x3d   : > { %1158 = vmatprep.mubr.msk.f32.mxu0 %vm273_vm0, %v242_v49  ;;  %1309 = vmatpush3.bf16.msra.mxu0 %v1306_v3 }
  0x40   : > { %1159 = vmatmul.mubr.msk.f32.gmra.mrb[16].mxu0 %vm273_vm0, %v243_v50 }
  0x41   : > { %1161 = vmatprep.mubr.msk.f32.mxu0 %vm273_vm0, %v244_v51 }
  0x44   : > { %1162 = vmatmul.mubr.msk.f32.gmra.mrb[18].mxu0 %vm273_vm0, %v245_v52 }
  0x45   : > { %1164 = vmatprep.mubr.msk.f32.mxu0 %vm273_vm0, %v246_v53 }
  0x48   : > { %1165 = vmatmul.mubr.msk.f32.gmra.mrb[20].mxu0 %vm273_vm0, %v247_v54 }
  0x49   : > { %1167 = vmatprep.mubr.msk.f32.mxu0 %vm273_vm0, %v248_v55 }
  0x4c   : > { %1168 = vmatmul.mubr.msk.f32.gmra.mrb[22].mxu0 %vm273_vm0, %v249_v56 }
  0x4d   : > { %1170 = vmatprep.mubr.msk.f32.mxu0 %vm273_vm0, %v250_v57 }
  0x50   : > { %1171 = vmatmul.mubr.msk.f32.gmra.mrb[24].mxu0 %vm273_vm0, %v251_v58 }
  0x51   : > { %1173 = vmatprep.mubr.msk.f32.mxu0 %vm273_vm0, %v252_v59 }
  0x54   : > { %1174 = vmatmul.mubr.msk.f32.gmra.mrb[26].mxu0 %vm273_vm0, %v253_v60 }
  0x55   : > { %1176 = vmatprep.mubr.msk.f32.mxu0 %vm273_vm0, %v254_v61 }
  0x58   : > { %1177 = vmatmul.mubr.msk.f32.gmra.mrb[28].mxu0 %vm273_vm0, %v255_v62 }
  0x59   : > { %1179 = vmatprep.mubr.msk.f32.mxu0 %vm273_vm0, %v256_v63 }
  0x5c   : > { %1180 = vmatmul.mubr.msk.f32.gmra.mrb[30].mxu0 %vm273_vm0, %v257_v0 }
  0xf3   : > { %v1136_v5 = vpop.f32.mrb[0].mxu0 }
  0xf4   : > { %v442_v6 = vadd.f32 %v1136_v5, %v1657_v4  ;;  %v436_v7 = vpop.f32.mrb[1].mxu0 }
  0xf5   : > { %v437_v8 = vadd.f32 %v1657_v4, %v436_v7 }
  0xf6   : > { %v596_v11 = vmax.f32 %v442_v6, 0.0 }
  0xf7   : > { %v595_v9 = vmax.f32 %v437_v8, 0.0  ;;  %v1139_v10 = vpop.f32.mrb[2].mxu0 }
  0xf8   : > { %v452_v12 = vadd.f32 %v1139_v10, %v1657_v4  ;;  %v446_v13 = vpop.f32.mrb[3].mxu0 }
  0xf9   : > { %v447_v14 = vadd.f32 %v1657_v4, %v446_v13  ;;  %1214 = vmatprep.mubr.f32.mxu0 %v595_v9 }
  0xfa   : > { %1215 = vmatmul.mubr.f32.vlgmr.msra.gmra.mrb[32].mxu0 %v596_v11  ;;  %v598_v17 = vmax.f32 %v452_v12, 0.0 }
  0xfb   : > { %v597_v15 = vmax.f32 %v447_v14, 0.0  ;;  %v1142_v16 = vpop.f32.mrb[4].mxu0 }
  0xfc   : > { %v462_v18 = vadd.f32 %v1142_v16, %v1657_v4  ;;  %v456_v19 = vpop.f32.mrb[5].mxu0 }
  0xfd   : > { %1217 = vmatprep.mubr.f32.mxu0 %v597_v15  ;;  %v457_v20 = vadd.f32 %v1657_v4, %v456_v19 }
  0xfe   : > { %1218 = vmatmul.mubr.f32.gmra.mrb[34].mxu0 %v598_v17  ;;  %v600_v23 = vmax.f32 %v462_v18, 0.0 }
  0xff   : > { %v1145_v21 = vpop.f32.mrb[6].mxu0  ;;  %v599_v22 = vmax.f32 %v457_v20, 0.0 }
 0x100   : > { %v472_v24 = vadd.f32 %v1145_v21, %v1657_v4  ;;  %v466_v25 = vpop.f32.mrb[7].mxu0 }
 0x101   : > { %v467_v26 = vadd.f32 %v1657_v4, %v466_v25  ;;  %1220 = vmatprep.mubr.f32.mxu1 %v599_v22 }
 0x102   : > { %1221 = vmatmul.mubr.f32.vlgmr.msra.gmra.mrb[0].mxu1 %v600_v23  ;;  %v602_v29 = vmax.f32 %v472_v24, 0.0 }
 0x103   : > { %v601_v27 = vmax.f32 %v467_v26, 0.0  ;;  %v1148_v28 = vpop.f32.mrb[8].mxu0 }
 0x104   : > { %v482_v30 = vadd.f32 %v1148_v28, %v1657_v4  ;;  %v476_v31 = vpop.f32.mrb[9].mxu0 }
 0x105   : > { %v477_v32 = vadd.f32 %v1657_v4, %v476_v31  ;;  %1223 = vmatprep.mubr.f32.mxu1 %v601_v27 }
 0x106   : > { %1224 = vmatmul.mubr.f32.gmra.mrb[2].mxu1 %v602_v29  ;;  %v604_v35 = vmax.f32 %v482_v30, 0.0 }
 0x107   : > { %v603_v33 = vmax.f32 %v477_v32, 0.0  ;;  %v1151_v34 = vpop.f32.mrb[10].mxu0 }
 0x108   : > { %v492_v36 = vadd.f32 %v1151_v34, %v1657_v4  ;;  %v486_v37 = vpop.f32.mrb[11].mxu0 }
 0x109   : > { %v487_v38 = vadd.f32 %v1657_v4, %v486_v37  ;;  %1226 = vmatprep.mubr.f32.mxu1 %v603_v33 }
 0x10a   : > { %1227 = vmatmul.mubr.f32.gmra.mrb[4].mxu1 %v604_v35  ;;  %v606_v41 = vmax.f32 %v492_v36, 0.0 }
 0x10b   : > { %v605_v39 = vmax.f32 %v487_v38, 0.0  ;;  %v1154_v40 = vpop.f32.mrb[12].mxu0  ;;  %v1697_v38 = vld [vmem:[%s1821_s4] ss:$0 sm:$0xff] }
 0x10c   : > { %v502_v42 = vadd.f32 %v1154_v40, %v1657_v4  ;;  %v496_v43 = vpop.f32.mrb[13].mxu0 }
 0x10d   : > { %v497_v44 = vadd.f32 %v1657_v4, %v496_v43  ;;  %1229 = vmatprep.mubr.f32.mxu1 %v605_v39 }
 0x10e   : > { %1230 = vmatmul.mubr.f32.gmra.mrb[6].mxu1 %v606_v41  ;;  %v608_v47 = vmax.f32 %v502_v42, 0.0 }
 0x10f   : > { %v607_v45 = vmax.f32 %v497_v44, 0.0  ;;  %v1157_v46 = vpop.f32.mrb[14].mxu0 }
 0x110   : > { %v512_v48 = vadd.f32 %v1157_v46, %v1657_v4  ;;  %v506_v49 = vpop.f32.mrb[15].mxu0 }
 0x111   : > { %v507_v50 = vadd.f32 %v1657_v4, %v506_v49  ;;  %1232 = vmatprep.mubr.f32.mxu1 %v607_v45 }
 0x112   : > { %1233 = vmatmul.mubr.f32.gmra.mrb[8].mxu1 %v608_v47  ;;  %v610_v53 = vmax.f32 %v512_v48, 0.0 }
 0x113   : > { %v609_v51 = vmax.f32 %v507_v50, 0.0  ;;  %v1160_v52 = vpop.f32.mrb[16].mxu0 }
 0x114   : > { %v522_v54 = vadd.f32 %v1160_v52, %v1657_v4  ;;  %v516_v55 = vpop.f32.mrb[17].mxu0 }
 0x115   : > { %v517_v56 = vadd.f32 %v1657_v4, %v516_v55  ;;  %1235 = vmatprep.mubr.f32.mxu1 %v609_v51 }
 0x116   : > { %1236 = vmatmul.mubr.f32.gmra.mrb[10].mxu1 %v610_v53  ;;  %v612_v59 = vmax.f32 %v522_v54, 0.0 }
 0x117   : > { %v611_v57 = vmax.f32 %v517_v56, 0.0  ;;  %v1163_v58 = vpop.f32.mrb[18].mxu0 }
 0x118   : > { %v532_v60 = vadd.f32 %v1163_v58, %v1657_v4  ;;  %v526_v61 = vpop.f32.mrb[19].mxu0 }
 0x119   : > { %v527_v62 = vadd.f32 %v1657_v4, %v526_v61  ;;  %1238 = vmatprep.mubr.f32.mxu1 %v611_v57 }
 0x11a   : > { %1239 = vmatmul.mubr.f32.gmra.mrb[12].mxu1 %v612_v59  ;;  %v614_v1 = vmax.f32 %v532_v60, 0.0 }
 0x11b   : > { %v613_v63 = vmax.f32 %v527_v62, 0.0  ;;  %v1166_v0 = vpop.f32.mrb[20].mxu0 }
 0x11c   : > { %v542_v2 = vadd.f32 %v1166_v0, %v1657_v4  ;;  %v536_v3 = vpop.f32.mrb[21].mxu0 }
 0x11d   : > { %v537_v5 = vadd.f32 %v1657_v4, %v536_v3  ;;  %1241 = vmatprep.mubr.f32.mxu1 %v613_v63 }
 0x11e   : > { %1242 = vmatmul.mubr.f32.gmra.mrb[14].mxu1 %v614_v1  ;;  %v616_v8 = vmax.f32 %v542_v2, 0.0 }
 0x11f   : > { %v615_v6 = vmax.f32 %v537_v5, 0.0  ;;  %v1169_v7 = vpop.f32.mrb[22].mxu0 }
 0x120   : > { %v552_v9 = vadd.f32 %v1169_v7, %v1657_v4  ;;  %v546_v10 = vpop.f32.mrb[23].mxu0 }
 0x121   : > { %v547_v11 = vadd.f32 %v1657_v4, %v546_v10  ;;  %1244 = vmatprep.mubr.f32.mxu1 %v615_v6 }
 0x122   : > { %1245 = vmatmul.mubr.f32.gmra.mrb[16].mxu1 %v616_v8  ;;  %v618_v14 = vmax.f32 %v552_v9, 0.0 }
 0x123   : > { %v617_v12 = vmax.f32 %v547_v11, 0.0  ;;  %v1172_v13 = vpop.f32.mrb[24].mxu0 }
 0x124   : > { %v562_v15 = vadd.f32 %v1172_v13, %v1657_v4  ;;  %v556_v16 = vpop.f32.mrb[25].mxu0 }
 0x125   : > { %v557_v17 = vadd.f32 %v1657_v4, %v556_v16  ;;  %1247 = vmatprep.mubr.f32.mxu1 %v617_v12 }
 0x126   : > { %1248 = vmatmul.mubr.f32.gmra.mrb[18].mxu1 %v618_v14  ;;  %v620_v20 = vmax.f32 %v562_v15, 0.0 }
 0x127   : > { %v619_v18 = vmax.f32 %v557_v17, 0.0  ;;  %v1175_v19 = vpop.f32.mrb[26].mxu0 }
 0x128   : > { %v572_v21 = vadd.f32 %v1175_v19, %v1657_v4  ;;  %v566_v22 = vpop.f32.mrb[27].mxu0 }
 0x129   : > { %v567_v23 = vadd.f32 %v1657_v4, %v566_v22  ;;  %1250 = vmatprep.mubr.f32.mxu1 %v619_v18 }
 0x12a   : > { %1251 = vmatmul.mubr.f32.gmra.mrb[20].mxu1 %v620_v20  ;;  %v622_v26 = vmax.f32 %v572_v21, 0.0 }
 0x12b   : > { %v621_v24 = vmax.f32 %v567_v23, 0.0  ;;  %v1178_v25 = vpop.f32.mrb[28].mxu0 }
 0x12c   : > { %v582_v27 = vadd.f32 %v1178_v25, %v1657_v4  ;;  %v576_v28 = vpop.f32.mrb[29].mxu0 }
 0x12d   : > { %v577_v29 = vadd.f32 %v1657_v4, %v576_v28  ;;  %1253 = vmatprep.mubr.f32.mxu1 %v621_v24 }
 0x12e   : > { %1254 = vmatmul.mubr.f32.gmra.mrb[22].mxu1 %v622_v26  ;;  %v624_v32 = vmax.f32 %v582_v27, 0.0 }
 0x12f   : > { %v623_v30 = vmax.f32 %v577_v29, 0.0  ;;  %v1181_v31 = vpop.f32.mrb[30].mxu0 }
 0x130   : > { %v592_v33 = vadd.f32 %v1181_v31, %v1657_v4  ;;  %v586_v34 = vpop.f32.mrb[31].mxu0 }
 0x131   : > { %v587_v35 = vadd.f32 %v1657_v4, %v586_v34  ;;  %1256 = vmatprep.mubr.f32.mxu1 %v623_v30 }
 0x132   : > { %1257 = vmatmul.mubr.f32.gmra.mrb[24].mxu1 %v624_v32  ;;  %v626_v37 = vmax.f32 %v592_v33, 0.0 }
 0x133   : > { %v625_v36 = vmax.f32 %v587_v35, 0.0 }
 0x135   : > { %1259 = vmatprep.mubr.f32.mxu1 %v625_v36 }
 0x136   : > { %1260 = vmatmul.mubr.f32.gmra.mrb[26].mxu1 %v626_v37 }
 0x1cd   : > { %v1216_v39 = vpop.f32.mrb[32].mxu0 }
 0x1ce   : > { %v722_v40 = vadd.f32 %v1216_v39, %v1697_v38  ;;  %v716_v41 = vpop.f32.mrb[33].mxu0 }
 0x1cf   : > { %v717_v4 = vadd.f32 %v1697_v38, %v716_v41 }
 0x1d0   : > { %876 = vst [vmem:[%s1701_s17 + $0x8] sm:$0xff] %v722_v40 }
 0x1d1   : > { %875 = vst [vmem:[%s1701_s17] sm:$0xff] %v717_v4  ;;  %v1219_v42 = vpop.f32.mrb[34].mxu0 }
 0x1d2   : > { %v732_v43 = vadd.f32 %v1219_v42, %v1697_v38  ;;  %v726_v44 = vpop.f32.mrb[35].mxu0 }
 0x1d3   : > { %v727_v45 = vadd.f32 %v1697_v38, %v726_v44 }
 0x1d4   : > { %878 = vst [vmem:[%s1701_s17 + $0x18] sm:$0xff] %v732_v43 }
 0x1d5   : > { %877 = vst [vmem:[%s1701_s17 + $0x10] sm:$0xff] %v727_v45  ;;  %v1222_v46 = vpop.f32.mrb[0].mxu1 }
 0x1d6   : > { %v742_v47 = vadd.f32 %v1222_v46, %v1697_v38  ;;  %v736_v48 = vpop.f32.mrb[1].mxu1 }
 0x1d7   : > { %v737_v49 = vadd.f32 %v1697_v38, %v736_v48 }
 0x1d8   : > { %880 = vst [vmem:[%s1701_s17 + $0x28] sm:$0xff] %v742_v47 }
 0x1d9   : > { %879 = vst [vmem:[%s1701_s17 + $0x20] sm:$0xff] %v737_v49  ;;  %v1225_v50 = vpop.f32.mrb[2].mxu1 }
 0x1da   : > { %v752_v51 = vadd.f32 %v1225_v50, %v1697_v38  ;;  %v746_v52 = vpop.f32.mrb[3].mxu1 }
 0x1db   : > { %v747_v53 = vadd.f32 %v1697_v38, %v746_v52 }
 0x1dc   : > { %882 = vst [vmem:[%s1701_s17 + $0x38] sm:$0xff] %v752_v51 }
 0x1dd   : > { %881 = vst [vmem:[%s1701_s17 + $0x30] sm:$0xff] %v747_v53  ;;  %v1228_v54 = vpop.f32.mrb[4].mxu1 }
 0x1de   : > { %v762_v55 = vadd.f32 %v1228_v54, %v1697_v38  ;;  %v756_v56 = vpop.f32.mrb[5].mxu1 }
 0x1df   : > { %v757_v57 = vadd.f32 %v1697_v38, %v756_v56 }
 0x1e0   : > { %884 = vst [vmem:[%s1701_s17 + $0x48] sm:$0xff] %v762_v55 }
 0x1e1   : > { %883 = vst [vmem:[%s1701_s17 + $0x40] sm:$0xff] %v757_v57  ;;  %v1231_v58 = vpop.f32.mrb[6].mxu1 }
 0x1e2   : > { %v772_v59 = vadd.f32 %v1231_v58, %v1697_v38  ;;  %v766_v60 = vpop.f32.mrb[7].mxu1 }
 0x1e3   : > { %v767_v61 = vadd.f32 %v1697_v38, %v766_v60 }
 0x1e4   : > { %886 = vst [vmem:[%s1701_s17 + $0x58] sm:$0xff] %v772_v59 }
 0x1e5   : > { %885 = vst [vmem:[%s1701_s17 + $0x50] sm:$0xff] %v767_v61  ;;  %v1234_v62 = vpop.f32.mrb[8].mxu1 }
 0x1e6   : > { %v782_v63 = vadd.f32 %v1234_v62, %v1697_v38  ;;  %v776_v0 = vpop.f32.mrb[9].mxu1 }
 0x1e7   : > { %v777_v1 = vadd.f32 %v1697_v38, %v776_v0 }
 0x1e8   : > { %888 = vst [vmem:[%s1701_s17 + $0x68] sm:$0xff] %v782_v63 }
 0x1e9   : > { %887 = vst [vmem:[%s1701_s17 + $0x60] sm:$0xff] %v777_v1  ;;  %v1237_v2 = vpop.f32.mrb[10].mxu1 }
 0x1ea   : > { %v792_v3 = vadd.f32 %v1237_v2, %v1697_v38  ;;  %v786_v5 = vpop.f32.mrb[11].mxu1 }
 0x1eb   : > { %v787_v6 = vadd.f32 %v1697_v38, %v786_v5 }
 0x1ec   : > { %890 = vst [vmem:[%s1701_s17 + $0x78] sm:$0xff] %v792_v3 }
 0x1ed   : > { %889 = vst [vmem:[%s1701_s17 + $0x70] sm:$0xff] %v787_v6  ;;  %v1240_v7 = vpop.f32.mrb[12].mxu1 }
 0x1ee   : > { %v802_v8 = vadd.f32 %v1240_v7, %v1697_v38  ;;  %v796_v9 = vpop.f32.mrb[13].mxu1 }
 0x1ef   : > { %v797_v10 = vadd.f32 %v1697_v38, %v796_v9 }
 0x1f0   : > { %892 = vst [vmem:[%s1701_s17 + $0x88] sm:$0xff] %v802_v8 }
 0x1f1   : > { %891 = vst [vmem:[%s1701_s17 + $0x80] sm:$0xff] %v797_v10  ;;  %v1243_v11 = vpop.f32.mrb[14].mxu1 }
 0x1f2   : > { %v812_v12 = vadd.f32 %v1243_v11, %v1697_v38  ;;  %v806_v13 = vpop.f32.mrb[15].mxu1 }
 0x1f3   : > { %v807_v14 = vadd.f32 %v1697_v38, %v806_v13 }
 0x1f4   : > { %894 = vst [vmem:[%s1701_s17 + $0x98] sm:$0xff] %v812_v12 }
 0x1f5   : > { %893 = vst [vmem:[%s1701_s17 + $0x90] sm:$0xff] %v807_v14  ;;  %v1246_v15 = vpop.f32.mrb[16].mxu1 }
 0x1f6   : > { %v822_v16 = vadd.f32 %v1246_v15, %v1697_v38  ;;  %v816_v17 = vpop.f32.mrb[17].mxu1 }
 0x1f7   : > { %v817_v18 = vadd.f32 %v1697_v38, %v816_v17 }
 0x1f8   : > { %896 = vst [vmem:[%s1701_s17 + $0xa8] sm:$0xff] %v822_v16 }
 0x1f9   : > { %895 = vst [vmem:[%s1701_s17 + $0xa0] sm:$0xff] %v817_v18  ;;  %v1249_v19 = vpop.f32.mrb[18].mxu1 }
 0x1fa   : > { %v832_v20 = vadd.f32 %v1249_v19, %v1697_v38  ;;  %v826_v21 = vpop.f32.mrb[19].mxu1 }
 0x1fb   : > { %v827_v22 = vadd.f32 %v1697_v38, %v826_v21 }
 0x1fc   : > { %898 = vst [vmem:[%s1701_s17 + $0xb8] sm:$0xff] %v832_v20 }
 0x1fd   : > { %897 = vst [vmem:[%s1701_s17 + $0xb0] sm:$0xff] %v827_v22  ;;  %v1252_v23 = vpop.f32.mrb[20].mxu1 }
 0x1fe   : > { %v842_v24 = vadd.f32 %v1252_v23, %v1697_v38  ;;  %v836_v25 = vpop.f32.mrb[21].mxu1 }
 0x1ff   : > { %v837_v26 = vadd.f32 %v1697_v38, %v836_v25 }
 0x200   : > { %900 = vst [vmem:[%s1701_s17 + $0xc8] sm:$0xff] %v842_v24 }
 0x201   : > { %899 = vst [vmem:[%s1701_s17 + $0xc0] sm:$0xff] %v837_v26  ;;  %v1255_v27 = vpop.f32.mrb[22].mxu1 }
 0x202   : > { %v852_v28 = vadd.f32 %v1255_v27, %v1697_v38  ;;  %v846_v29 = vpop.f32.mrb[23].mxu1 }
 0x203   : > { %v847_v30 = vadd.f32 %v1697_v38, %v846_v29 }
 0x204   : > { %902 = vst [vmem:[%s1701_s17 + $0xd8] sm:$0xff] %v852_v28 }
 0x205   : > { %901 = vst [vmem:[%s1701_s17 + $0xd0] sm:$0xff] %v847_v30  ;;  %v1258_v31 = vpop.f32.mrb[24].mxu1 }
 0x206   : > { %v862_v32 = vadd.f32 %v1258_v31, %v1697_v38  ;;  %v856_v33 = vpop.f32.mrb[25].mxu1 }
 0x207   : > { %v857_v34 = vadd.f32 %v1697_v38, %v856_v33 }
 0x208   : > { %904 = vst [vmem:[%s1701_s17 + $0xe8] sm:$0xff] %v862_v32 }
 0x209   : > { %903 = vst [vmem:[%s1701_s17 + $0xe0] sm:$0xff] %v857_v34  ;;  %v1261_v35 = vpop.f32.mrb[26].mxu1 }
 0x20a   : > { %v872_v36 = vadd.f32 %v1261_v35, %v1697_v38  ;;  %v866_v37 = vpop.f32.mrb[27].mxu1 }
 0x20b   : > { %v867_v39 = vadd.f32 %v1697_v38, %v866_v37 }
 0x20c   : > { %906 = vst [vmem:[%s1701_s17 + $0xf8] sm:$0xff] %v872_v36 }
 0x20d   : > { %905 = vst [vmem:[%s1701_s17 + $0xf0] sm:$0xff] %v867_v39 }
 0x20e   : > { %1380 = shalt.err (!%p1377_p3)
}
 0x20f   : > { %s1381_s12 = scalar_lea.hbm %s1767_s6, 4096  ;;  %s1385_s14 = scalar_lea.hbm %s1822_s5, 16384 }
 0x210   : > { %p1382_p4 = scmp.ne.s32.totalorder %s1767_s6, %s1381_s12  ;;  %p1386_p9 = scmp.lt.u32.totalorder %s1767_s6, %s1822_s5 }
 0x211   : > { %p1387_p10 = scmp.lt.u32.totalorder %s1385_s14, %s1381_s12  ;;  %p1389_p12 = scmp.lt.u32.totalorder %s1381_s12, %s1767_s6 }
 0x212   : > { %p1383_p7 = pnand %p1382_p4, %p1502_p5 }
 0x213   : > { %p1388_p11 = por %p1387_p10, %p1386_p9 }
 0x214   : > { %p1384_p8 = pneg %p1383_p7 }
 0x215   : > { %p1390_p13 = por %p1389_p12, %p1388_p11 }
 0x217   : > { %p1391_p0 = pnand %p1390_p13, %p1384_p8 }
 0x219   : > { %1394 = shalt.err (!%p1391_p0)
}
 0x21a   : > { %s1432_s17 = smov 128   ;;  %s1433_s25 = smov 8  }
 0x21b   : > { %1326 = dma.vmem_to_hbm [thread:$0]  (%p1502_p5), %s1769_s11, 4096, %s1767_s6, %s1776_s22, %s1432_s17, %s1432_s17, %s1433_s25  }
 0x21c PF: > { %p1332_p1 = scmp.ge.s32.totalorder %s1429_s21, 2  ;;  %s936_s26 = sand.u32 1, %s1417_s18  }
 0x21d   : > { %s937_s30 = scalar_lea.sflag [#allocation3], %s936_s26 }
 0x21e   : > { %p1329_p2 = pnand %p1332_p1, %p1506_p6 }
 0x220   : > { %1412 = dma.done.wait (!%p1329_p2), %s937_s30, 4096  }
 0x221   : > { %1414 = vsyncadd (!%p1329_p2), %s937_s30, 4294963200  ;;  %p15_p3 = scmp.ge.s32.totalorder %s1489_s24, 6   ;;  %s1825_s18 = smov %s1421_s19 }
 0x222   : > { %s1826_s19 = smov %s1425_s20  ;;  %s1827_s20 = smov %s1500_s27 }
 0x223   : > { %s1828_s21 = smov %s1489_s24  ;;  %17 = sbr.rel (!%p15_p3) target bundleno = 3 (0x3), region = 75 }
 0x22a   :  { %942 = vsyncpa [#allocation3], 1 }
 0x22b   :  { %944 = vsyncpa [#allocation3 + $0x1], 1 }

// kernel: tpu_custom_call.1
= control target key start
LH: loop header
LB: loop body
LE: loop exit
PB: predicated region body
PF: predicated region fallthrough
CT: control target
= control target key end

     0   :  { %10 = vsyncpa [#allocation3], 0  ;;  %s1817_s0 = inlined_call_operand.vmem [shape: f32[1024,64], index: 0, kind: input, shape index: {}]   ;;  %s1818_s1 = inlined_call_operand.vmem [shape: f32[64,128], index: 1, kind: input, shape index: {}]   ;;  %s1819_s2 = inlined_call_operand.vmem [shape: f32[1,128], index: 2, kind: input, shape index: {}]   ;;  %s1820_s3 = inlined_call_operand.vmem [shape: f32[128,128], index: 3, kind: input, shape index: {}]   ;;  %s1821_s4 = inlined_call_operand.vmem [shape: f32[1,128], index: 4, kind: input, shape index: {}]   ;;  %s1822_s5 = inlined_call_operand.hbm [shape: f32[1024,128], index: 5, kind: output, shape index: {}]  }
   0x1   :  { %12 = vsyncpa [#allocation3 + $0x1], 0  ;;  %s1464_s18 = smov 0   ;;  %s1466_s19 = smov 0  }
   0x2   :  { %s1468_s20 = smov 0   ;;  %s1470_s21 = smov 0  }
   0x3 LB: > { %s1485_s22 = sadd.s32 4294967295, %s1429_s21   ;;  %s983_s23 = sadd.s32 4294967294, %s1429_s21   ;;  %s1429_s21 = sphi %s1470_s21, %s1828_s21   ;;  %s1425_s20 = sphi %s1468_s20, %s1827_s20   ;;  %s1421_s19 = sphi %s1466_s19, %s1826_s19   ;;  %s1417_s18 = sphi %s1464_s18, %s1825_s18  }
   0x4   : > { %s1489_s24 = sadd.s32 1, %s1429_s21   ;;  %s135_s25 = sadd.s32 1, %s1425_s20 }
   0x5   : > { %s132_s26 = ssub.s32 %s1429_s21, %s1489_s24  ;;  %p145_p0 = scmp.ne.s32.totalorder %s1425_s20, %s1421_s19 }
   0x6   : > { %p133_p1 = scmp.eq.s32.totalorder %s132_s26, 0  ;;  %p146_p2 = scmp.eq.s32.totalorder %s1485_s22, 3 }
   0x7   : > { %p151_p3 = scmp.ne.s32.totalorder %s1421_s19, %s1417_s18  ;;  %p152_p4 = scmp.eq.s32.totalorder %s983_s23, 3 }
   0x8   : > { %s1500_s27 = scalar_select %p133_p1, %s1425_s20, %s135_s25  }
   0x9   : > { %p1502_p5 = por %p146_p2, %p145_p0  ;;  %p1506_p6 = por %p152_p4, %p151_p3 }
   0xa   : > { %p986_p7 = scmp.ge.s32.totalorder %s1429_s21, 1  ;;  %p191_p8 = scmp.lt.s32.totalorder %s1429_s21, 5 }
   0xc   : > { %p192_p9 = pnand %p986_p7, %p191_p8 }
   0xd   : > { %v258_v0 = vld [vmem:[%s1818_s1] sm:$0xff] (!%p192_p9)  ;;  %v259_v1 = vld [vmem:[%s1818_s1 + $0x8] sm:$0xff] (!%p192_p9)  ;;  %v260_v2 = vld [vmem:[%s1818_s1 + $0x10] sm:$0xff] (!%p192_p9)  ;;  %s988_s11 = sshll.u32 (!%p192_p9), %s1485_s22, 5  ;;  %vm273_vm0 = vcmask (!%p192_p9), 523264   ;;  %s1029_s25 = sshll.u32 (!%p192_p9), %s1485_s22, 12 }
   0xe   : > { %195 = sbr.rel (%p192_p9) target bundleno = 540 (0x21c), region = 40  ;;  %v1262_v3 = vpack.c.bf16 (!%p192_p9), %v259_v1, %v258_v0  ;;  %v261_v4 = vld [vmem:[%s1818_s1 + $0x18] sm:$0xff] (!%p192_p9)  ;;  %p220_p10 = scmp.lt.s32.totalorder (!%p192_p9), %s988_s11, 127  ;;  %v262_v6 = vld [vmem:[%s1818_s1 + $0x20] sm:$0xff] (!%p192_p9)  ;;  %v263_v7 = vld [vmem:[%s1818_s1 + $0x28] sm:$0xff] (!%p192_p9) }
   0xf   : > { %v1266_v5 = vpack.c.bf16 (!%p192_p9), %v261_v4, %v260_v2  ;;  %v627_v8 = vld [vmem:[%s1820_s3] sm:$0xff] (!%p192_p9)  ;;  %v628_v9 = vld [vmem:[%s1820_s3 + $0x8] sm:$0xff] (!%p192_p9)  ;;  %v629_v11 = vld [vmem:[%s1820_s3 + $0x10] sm:$0xff] (!%p192_p9)  ;;  %v1270_v13 = vpack.c.bf16 (!%p192_p9), %v263_v7, %v262_v6  ;;  %s1767_s6 = scalar_lea.hbm (!%p192_p9), %s1822_s5, %s1029_s25  ;;  %s1431_s8 = smov (!%p192_p9), [#allocation2]  }
  0x10   : > { %1263 = vmatprep.subr.bf16.mxu0 (!%p192_p9), %v1262_v3  ;;  %v1278_v10 = vpack.c.bf16 (!%p192_p9), %v628_v9, %v627_v8  ;;  %v630_v12 = vld [vmem:[%s1820_s3 + $0x18] sm:$0xff] (!%p192_p9)  ;;  %v264_v14 = vld [vmem:[%s1818_s1 + $0x30] sm:$0xff] (!%p192_p9)  ;;  %v631_v18 = vld [vmem:[%s1820_s3 + $0x20] sm:$0xff] (!%p192_p9)  ;;  %s1371_s9 = sshll.u32 (!%p192_p9), %s1431_s8, 4  ;;  %s1372_s9 = int_to_ptr.vmem [resolvable:$false] %s1371_s9 }
  0x11   : > { %1265 = vmatpush3.bf16.msra.mxu0 (!%p192_p9), %v1262_v3  ;;  %v265_v15 = vld [vmem:[%s1818_s1 + $0x38] sm:$0xff] (!%p192_p9)  ;;  %v1282_v17 = vpack.c.bf16 (!%p192_p9), %v630_v12, %v629_v11  ;;  %v632_v19 = vld [vmem:[%s1820_s3 + $0x28] sm:$0xff] (!%p192_p9)  ;;  %v633_v22 = vld [vmem:[%s1820_s3 + $0x30] sm:$0xff] (!%p192_p9) }
  0x12   : > { %1267 = vmatprep.subr.bf16.mxu0 (!%p192_p9), %v1266_v5  ;;  %1310 = vmatprep.subr.bf16.mxu1 (!%p192_p9), %v1278_v10  ;;  %v1274_v20 = vpack.c.bf16 (!%p192_p9), %v265_v15, %v264_v14  ;;  %v1286_v21 = vpack.c.bf16 (!%p192_p9), %v632_v19, %v631_v18  ;;  %v634_v23 = vld [vmem:[%s1820_s3 + $0x38] sm:$0xff] (!%p192_p9)  ;;  %v635_v26 = vld [vmem:[%s1820_s3 + $0x40] sm:$0xff] (!%p192_p9)  ;;  %v636_v27 = vld [vmem:[%s1820_s3 + $0x48] sm:$0xff] (!%p192_p9) }
  0x13   : > { %1318 = vmatpush3.bf16.msra.mxu1 (!%p192_p9), %v1278_v10  ;;  %v1290_v24 = vpack.c.bf16 (!%p192_p9), %v634_v23, %v633_v22  ;;  %v1294_v29 = vpack.c.bf16 (!%p192_p9), %v636_v27, %v635_v26  ;;  %v637_v31 = vld [vmem:[%s1820_s3 + $0x50] sm:$0xff] (!%p192_p9)  ;;  %v638_v32 = vld [vmem:[%s1820_s3 + $0x58] sm:$0xff] (!%p192_p9)  ;;  %v639_v36 = vld [vmem:[%s1820_s3 + $0x60] sm:$0xff] (!%p192_p9) }
  0x14   : > { %1311 = vmatprep.subr.bf16.mxu1 (!%p192_p9), %v1282_v17  ;;  %v1298_v34 = vpack.c.bf16 (!%p192_p9), %v638_v32, %v637_v31  ;;  %v640_v37 = vld [vmem:[%s1820_s3 + $0x68] sm:$0xff] (!%p192_p9)  ;;  %v641_v1 = vld [vmem:[%s1820_s3 + $0x70] sm:$0xff] (!%p192_p9)  ;;  %v642_v2 = vld [vmem:[%s1820_s3 + $0x78] sm:$0xff] (!%p192_p9) }
  0x15   : > { %s1830_s11 = smov (!%p220_p10, %s988_s11), 127  ;;  %1269 = vmatpush3.bf16.msra.mxu0 %v1266_v5  ;;  %v1302_v39 = vpack.c.bf16 %v640_v37, %v639_v36  ;;  %v1306_v3 = vpack.c.bf16 %v642_v2, %v641_v1  ;;  %v1657_v4 = vld [vmem:[%s1819_s2] ss:$0 sm:$0xff] }
  0x16   : > { %s989_s10 = sshll.u32 %s1830_s11, 3  ;;  %1271 = vmatprep.subr.bf16.mxu0 %v1270_v13 }
  0x17   : > { %s1552_s23 = scalar_lea.vmem %s1817_s0, %s989_s10  ;;  %1319 = vmatpush3.bf16.msra.mxu1 %v1282_v17  ;;  %s1373_s10 = scalar_lea.vmem %s1372_s9, 8192 }
  0x18   : > { %v226_v16 = vld [vmem:[%s1552_s23] sm:$0xff]  ;;  %1312 = vmatprep.subr.bf16.mxu1 %v1286_v21  ;;  %v227_v25 = vld [vmem:[%s1552_s23 + $0x8] sm:$0xff]  ;;  %v228_v28 = vld [vmem:[%s1552_s23 + $0x10] sm:$0xff] }
  0x19   : > { %1134 = vmatprep.mubr.msk.f32.mxu0 %vm273_vm0, %v226_v16  ;;  %1273 = vmatpush3.bf16.msra.mxu0 %v1270_v13  ;;  %v229_v30 = vld [vmem:[%s1552_s23 + $0x18] sm:$0xff]  ;;  %v230_v33 = vld [vmem:[%s1552_s23 + $0x20] sm:$0xff]  ;;  %v231_v35 = vld [vmem:[%s1552_s23 + $0x28] sm:$0xff] }
  0x1a   : > { %1275 = vmatprep.subr.bf16.mxu0 %v1274_v20  ;;  %v232_v38 = vld [vmem:[%s1552_s23 + $0x30] sm:$0xff]  ;;  %v233_v40 = vld [vmem:[%s1552_s23 + $0x38] sm:$0xff]  ;;  %v234_v41 = vld [vmem:[%s1552_s23 + $0x40] sm:$0xff] }
  0x1b   : > { %1320 = vmatpush3.bf16.msra.mxu1 %v1286_v21  ;;  %v235_v42 = vld [vmem:[%s1552_s23 + $0x48] sm:$0xff]  ;;  %v236_v43 = vld [vmem:[%s1552_s23 + $0x50] sm:$0xff]  ;;  %v237_v44 = vld [vmem:[%s1552_s23 + $0x58] sm:$0xff] }
  0x1c   : > { %1313 = vmatprep.subr.bf16.mxu1 %v1290_v24  ;;  %v238_v45 = vld [vmem:[%s1552_s23 + $0x60] sm:$0xff]  ;;  %v239_v46 = vld [vmem:[%s1552_s23 + $0x68] sm:$0xff]  ;;  %v240_v47 = vld [vmem:[%s1552_s23 + $0x70] sm:$0xff] }
  0x1d   : > { %1277 = vmatpush3.bf16.msra.mxu0 %v1274_v20  ;;  %v241_v48 = vld [vmem:[%s1552_s23 + $0x78] sm:$0xff]  ;;  %v242_v49 = vld [vmem:[%s1552_s23 + $0x80] sm:$0xff]  ;;  %v243_v50 = vld [vmem:[%s1552_s23 + $0x88] sm:$0xff] }
  0x1e   : > { %1279 = vmatprep.subr.bf16.mxu0 %v1278_v10  ;;  %v244_v51 = vld [vmem:[%s1552_s23 + $0x90] sm:$0xff]  ;;  %v245_v52 = vld [vmem:[%s1552_s23 + $0x98] sm:$0xff]  ;;  %v246_v53 = vld [vmem:[%s1552_s23 + $0xa0] sm:$0xff] }
  0x1f   : > { %1321 = vmatpush3.bf16.msra.mxu1 %v1290_v24  ;;  %v247_v54 = vld [vmem:[%s1552_s23 + $0xa8] sm:$0xff]  ;;  %v248_v55 = vld [vmem:[%s1552_s23 + $0xb0] sm:$0xff]  ;;  %v249_v56 = vld [vmem:[%s1552_s23 + $0xb8] sm:$0xff] }
  0x20   : > { %1135 = vmatmul.mubr.msk.f32.vlgmr.msra.gmra.mrb[0].mxu0 %vm273_vm0, %v227_v25  ;;  %1314 = vmatprep.subr.bf16.mxu1 %v1294_v29  ;;  %v250_v57 = vld [vmem:[%s1552_s23 + $0xc0] sm:$0xff]  ;;  %v251_v58 = vld [vmem:[%s1552_s23 + $0xc8] sm:$0xff]  ;;  %v252_v59 = vld [vmem:[%s1552_s23 + $0xd0] sm:$0xff] }
  0x21   : > { %1137 = vmatprep.mubr.msk.f32.mxu0 %vm273_vm0, %v228_v28  ;;  %1281 = vmatpush3.bf16.msra.mxu0 %v1278_v10  ;;  %v253_v60 = vld [vmem:[%s1552_s23 + $0xd8] sm:$0xff]  ;;  %v254_v61 = vld [vmem:[%s1552_s23 + $0xe0] sm:$0xff]  ;;  %v255_v62 = vld [vmem:[%s1552_s23 + $0xe8] sm:$0xff] }
  0x22   : > { %1283 = vmatprep.subr.bf16.mxu0 %v1282_v17  ;;  %v256_v63 = vld [vmem:[%s1552_s23 + $0xf0] sm:$0xff]  ;;  %v257_v0 = vld [vmem:[%s1552_s23 + $0xf8] sm:$0xff]  ;;  %s216_s23 = sand.u32 1, %s1421_s19  }
  0x23   : > { %1322 = vmatpush3.bf16.msra.mxu1 %v1294_v29  ;;  %s987_s14 = sshll.u32 %s216_s23, 8  ;;  %s1776_s22 = scalar_lea.sflag [#allocation3], %s216_s23 }
  0x24   : > { %1138 = vmatmul.mubr.msk.f32.gmra.mrb[2].mxu0 %vm273_vm0, %v229_v30  ;;  %1315 = vmatprep.subr.bf16.mxu1 %v1298_v34  ;;  %s1701_s17 = scalar_lea.vmem [#allocation2], %s987_s14 }
  0x25   : > { %1140 = vmatprep.mubr.msk.f32.mxu0 %vm273_vm0, %v230_v33  ;;  %1285 = vmatpush3.bf16.msra.mxu0 %v1282_v17  ;;  %s921_s11 = sshll.u32 %s1701_s17, 4  ;;  %s1769_s11 = int_to_ptr.vmem [resolvable:$true] %s921_s11 }
  0x26   : > { %1287 = vmatprep.subr.bf16.mxu0 %v1286_v21  ;;  %s1367_s7 = scalar_lea.vmem %s1769_s11, 4096  ;;  %p1374_p0 = scmp.lt.s32.totalorder %s1769_s11, %s1372_s9 }
  0x27   : > { %1323 = vmatpush3.bf16.msra.mxu1 %v1298_v34  ;;  %p1368_p11 = scmp.ne.s32.totalorder %s1769_s11, %s1367_s7  ;;  %p1375_p1 = scmp.lt.s32.totalorder %s1373_s10, %s1367_s7 }
  0x28   : > { %1141 = vmatmul.mubr.msk.f32.gmra.mrb[4].mxu0 %vm273_vm0, %v231_v35  ;;  %1316 = vmatprep.subr.bf16.mxu1 %v1302_v39 }
  0x29   : > { %1143 = vmatprep.mubr.msk.f32.mxu0 %vm273_vm0, %v232_v38  ;;  %1289 = vmatpush3.bf16.msra.mxu0 %v1286_v21  ;;  %p1369_p12 = pnand %p1368_p11, %p1502_p5  ;;  %p1376_p2 = por %p1375_p1, %p1374_p0 }
  0x2a   : > { %1291 = vmatprep.subr.bf16.mxu0 %v1290_v24 }
  0x2b   : > { %1324 = vmatpush3.bf16.msra.mxu1 %v1302_v39  ;;  %p1370_p13 = pneg %p1369_p12 }
  0x2c   : > { %1144 = vmatmul.mubr.msk.f32.gmra.mrb[6].mxu0 %vm273_vm0, %v233_v40  ;;  %1317 = vmatprep.subr.bf16.mxu1 %v1306_v3 }
  0x2d   : > { %1146 = vmatprep.mubr.msk.f32.mxu0 %vm273_vm0, %v234_v41  ;;  %1293 = vmatpush3.bf16.msra.mxu0 %v1290_v24  ;;  %p1377_p3 = pnand %p1376_p2, %p1370_p13 }
  0x2e   : > { %1295 = vmatprep.subr.bf16.mxu0 %v1294_v29 }
  0x2f   : > { %1325 = vmatpush3.bf16.msra.mxu1 %v1306_v3 }
  0x30   : > { %1147 = vmatmul.mubr.msk.f32.gmra.mrb[8].mxu0 %vm273_vm0, %v235_v42 }
  0x31   : > { %1149 = vmatprep.mubr.msk.f32.mxu0 %vm273_vm0, %v236_v43  ;;  %1297 = vmatpush3.bf16.msra.mxu0 %v1294_v29 }
  0x32   : > { %1299 = vmatprep.subr.bf16.mxu0 %v1298_v34 }
  0x34   : > { %1150 = vmatmul.mubr.msk.f32.gmra.mrb[10].mxu0 %vm273_vm0, %v237_v44 }
  0x35   : > { %1152 = vmatprep.mubr.msk.f32.mxu0 %vm273_vm0, %v238_v45  ;;  %1301 = vmatpush3.bf16.msra.mxu0 %v1298_v34 }
  0x36   : > { %1303 = vmatprep.subr.bf16.mxu0 %v1302_v39 }
  0x38   : > { %1153 = vmatmul.mubr.msk.f32.gmra.mrb[12].mxu0 %vm273_vm0, %v239_v46 }
  0x39   : > { %1155 = vmatprep.mubr.msk.f32.mxu0 %vm273_vm0, %v240_v47  ;;  %1305 = vmatpush3.bf16.msra.mxu0 %v1302_v39 }
  0x3a   : > { %1307 = vmatprep.subr.bf16.mxu0 %v1306_v3 }
  0x3c   : > { %1156 = vmatmul.mubr.msk.f32.gmra.mrb[14].mxu0 %vm273_vm0, %v241_v48 }
  0x3d   : > { %1158 = vmatprep.mubr.msk.f32.mxu0 %vm273_vm0, %v242_v49  ;;  %1309 = vmatpush3.bf16.msra.mxu0 %v1306_v3 }
  0x40   : > { %1159 = vmatmul.mubr.msk.f32.gmra.mrb[16].mxu0 %vm273_vm0, %v243_v50 }
  0x41   : > { %1161 = vmatprep.mubr.msk.f32.mxu0 %vm273_vm0, %v244_v51 }
  0x44   : > { %1162 = vmatmul.mubr.msk.f32.gmra.mrb[18].mxu0 %vm273_vm0, %v245_v52 }
  0x45   : > { %1164 = vmatprep.mubr.msk.f32.mxu0 %vm273_vm0, %v246_v53 }
  0x48   : > { %1165 = vmatmul.mubr.msk.f32.gmra.mrb[20].mxu0 %vm273_vm0, %v247_v54 }
  0x49   : > { %1167 = vmatprep.mubr.msk.f32.mxu0 %vm273_vm0, %v248_v55 }
  0x4c   : > { %1168 = vmatmul.mubr.msk.f32.gmra.mrb[22].mxu0 %vm273_vm0, %v249_v56 }
  0x4d   : > { %1170 = vmatprep.mubr.msk.f32.mxu0 %vm273_vm0, %v250_v57 }
  0x50   : > { %1171 = vmatmul.mubr.msk.f32.gmra.mrb[24].mxu0 %vm273_vm0, %v251_v58 }
  0x51   : > { %1173 = vmatprep.mubr.msk.f32.mxu0 %vm273_vm0, %v252_v59 }
  0x54   : > { %1174 = vmatmul.mubr.msk.f32.gmra.mrb[26].mxu0 %vm273_vm0, %v253_v60 }
  0x55   : > { %1176 = vmatprep.mubr.msk.f32.mxu0 %vm273_vm0, %v254_v61 }
  0x58   : > { %1177 = vmatmul.mubr.msk.f32.gmra.mrb[28].mxu0 %vm273_vm0, %v255_v62 }
  0x59   : > { %1179 = vmatprep.mubr.msk.f32.mxu0 %vm273_vm0, %v256_v63 }
  0x5c   : > { %1180 = vmatmul.mubr.msk.f32.gmra.mrb[30].mxu0 %vm273_vm0, %v257_v0 }
  0xf3   : > { %v1136_v5 = vpop.f32.mrb[0].mxu0 }
  0xf4   : > { %v442_v6 = vadd.f32 %v1136_v5, %v1657_v4  ;;  %v436_v7 = vpop.f32.mrb[1].mxu0 }
  0xf5   : > { %v437_v8 = vadd.f32 %v1657_v4, %v436_v7 }
  0xf6   : > { %v596_v11 = vmax.f32 %v442_v6, 0.0 }
  0xf7   : > { %v595_v9 = vmax.f32 %v437_v8, 0.0  ;;  %v1139_v10 = vpop.f32.mrb[2].mxu0 }
  0xf8   : > { %v452_v12 = vadd.f32 %v1139_v10, %v1657_v4  ;;  %v446_v13 = vpop.f32.mrb[3].mxu0 }
  0xf9   : > { %v447_v14 = vadd.f32 %v1657_v4, %v446_v13  ;;  %1214 = vmatprep.mubr.f32.mxu0 %v595_v9 }
  0xfa   : > { %1215 = vmatmul.mubr.f32.vlgmr.msra.gmra.mrb[32].mxu0 %v596_v11  ;;  %v598_v17 = vmax.f32 %v452_v12, 0.0 }
  0xfb   : > { %v597_v15 = vmax.f32 %v447_v14, 0.0  ;;  %v1142_v16 = vpop.f32.mrb[4].mxu0 }
  0xfc   : > { %v462_v18 = vadd.f32 %v1142_v16, %v1657_v4  ;;  %v456_v19 = vpop.f32.mrb[5].mxu0 }
  0xfd   : > { %1217 = vmatprep.mubr.f32.mxu0 %v597_v15  ;;  %v457_v20 = vadd.f32 %v1657_v4, %v456_v19 }
  0xfe   : > { %1218 = vmatmul.mubr.f32.gmra.mrb[34].mxu0 %v598_v17  ;;  %v600_v23 = vmax.f32 %v462_v18, 0.0 }
  0xff   : > { %v1145_v21 = vpop.f32.mrb[6].mxu0  ;;  %v599_v22 = vmax.f32 %v457_v20, 0.0 }
 0x100   : > { %v472_v24 = vadd.f32 %v1145_v21, %v1657_v4  ;;  %v466_v25 = vpop.f32.mrb[7].mxu0 }
 0x101   : > { %v467_v26 = vadd.f32 %v1657_v4, %v466_v25  ;;  %1220 = vmatprep.mubr.f32.mxu1 %v599_v22 }
 0x102   : > { %1221 = vmatmul.mubr.f32.vlgmr.msra.gmra.mrb[0].mxu1 %v600_v23  ;;  %v602_v29 = vmax.f32 %v472_v24, 0.0 }
 0x103   : > { %v601_v27 = vmax.f32 %v467_v26, 0.0  ;;  %v1148_v28 = vpop.f32.mrb[8].mxu0 }
 0x104   : > { %v482_v30 = vadd.f32 %v1148_v28, %v1657_v4  ;;  %v476_v31 = vpop.f32.mrb[9].mxu0 }
 0x105   : > { %v477_v32 = vadd.f32 %v1657_v4, %v476_v31  ;;  %1223 = vmatprep.mubr.f32.mxu1 %v601_v27 }
 0x106   : > { %1224 = vmatmul.mubr.f32.gmra.mrb[2].mxu1 %v602_v29  ;;  %v604_v35 = vmax.f32 %v482_v30, 0.0 }
 0x107   : > { %v603_v33 = vmax.f32 %v477_v32, 0.0  ;;  %v1151_v34 = vpop.f32.mrb[10].mxu0 }
 0x108   : > { %v492_v36 = vadd.f32 %v1151_v34, %v1657_v4  ;;  %v486_v37 = vpop.f32.mrb[11].mxu0 }
 0x109   : > { %v487_v38 = vadd.f32 %v1657_v4, %v486_v37  ;;  %1226 = vmatprep.mubr.f32.mxu1 %v603_v33 }
 0x10a   : > { %1227 = vmatmul.mubr.f32.gmra.mrb[4].mxu1 %v604_v35  ;;  %v606_v41 = vmax.f32 %v492_v36, 0.0 }
 0x10b   : > { %v605_v39 = vmax.f32 %v487_v38, 0.0  ;;  %v1154_v40 = vpop.f32.mrb[12].mxu0  ;;  %v1697_v38 = vld [vmem:[%s1821_s4] ss:$0 sm:$0xff] }
 0x10c   : > { %v502_v42 = vadd.f32 %v1154_v40, %v1657_v4  ;;  %v496_v43 = vpop.f32.mrb[13].mxu0 }
 0x10d   : > { %v497_v44 = vadd.f32 %v1657_v4, %v496_v43  ;;  %1229 = vmatprep.mubr.f32.mxu1 %v605_v39 }
 0x10e   : > { %1230 = vmatmul.mubr.f32.gmra.mrb[6].mxu1 %v606_v41  ;;  %v608_v47 = vmax.f32 %v502_v42, 0.0 }
 0x10f   : > { %v607_v45 = vmax.f32 %v497_v44, 0.0  ;;  %v1157_v46 = vpop.f32.mrb[14].mxu0 }
 0x110   : > { %v512_v48 = vadd.f32 %v1157_v46, %v1657_v4  ;;  %v506_v49 = vpop.f32.mrb[15].mxu0 }
 0x111   : > { %v507_v50 = vadd.f32 %v1657_v4, %v506_v49  ;;  %1232 = vmatprep.mubr.f32.mxu1 %v607_v45 }
 0x112   : > { %1233 = vmatmul.mubr.f32.gmra.mrb[8].mxu1 %v608_v47  ;;  %v610_v53 = vmax.f32 %v512_v48, 0.0 }
 0x113   : > { %v609_v51 = vmax.f32 %v507_v50, 0.0  ;;  %v1160_v52 = vpop.f32.mrb[16].mxu0 }
 0x114   : > { %v522_v54 = vadd.f32 %v1160_v52, %v1657_v4  ;;  %v516_v55 = vpop.f32.mrb[17].mxu0 }
 0x115   : > { %v517_v56 = vadd.f32 %v1657_v4, %v516_v55  ;;  %1235 = vmatprep.mubr.f32.mxu1 %v609_v51 }
 0x116   : > { %1236 = vmatmul.mubr.f32.gmra.mrb[10].mxu1 %v610_v53  ;;  %v612_v59 = vmax.f32 %v522_v54, 0.0 }
 0x117   : > { %v611_v57 = vmax.f32 %v517_v56, 0.0  ;;  %v1163_v58 = vpop.f32.mrb[18].mxu0 }
 0x118   : > { %v532_v60 = vadd.f32 %v1163_v58, %v1657_v4  ;;  %v526_v61 = vpop.f32.mrb[19].mxu0 }
 0x119   : > { %v527_v62 = vadd.f32 %v1657_v4, %v526_v61  ;;  %1238 = vmatprep.mubr.f32.mxu1 %v611_v57 }
 0x11a   : > { %1239 = vmatmul.mubr.f32.gmra.mrb[12].mxu1 %v612_v59  ;;  %v614_v1 = vmax.f32 %v532_v60, 0.0 }
 0x11b   : > { %v613_v63 = vmax.f32 %v527_v62, 0.0  ;;  %v1166_v0 = vpop.f32.mrb[20].mxu0 }
 0x11c   : > { %v542_v2 = vadd.f32 %v1166_v0, %v1657_v4  ;;  %v536_v3 = vpop.f32.mrb[21].mxu0 }
 0x11d   : > { %v537_v5 = vadd.f32 %v1657_v4, %v536_v3  ;;  %1241 = vmatprep.mubr.f32.mxu1 %v613_v63 }
 0x11e   : > { %1242 = vmatmul.mubr.f32.gmra.mrb[14].mxu1 %v614_v1  ;;  %v616_v8 = vmax.f32 %v542_v2, 0.0 }
 0x11f   : > { %v615_v6 = vmax.f32 %v537_v5, 0.0  ;;  %v1169_v7 = vpop.f32.mrb[22].mxu0 }
 0x120   : > { %v552_v9 = vadd.f32 %v1169_v7, %v1657_v4  ;;  %v546_v10 = vpop.f32.mrb[23].mxu0 }
 0x121   : > { %v547_v11 = vadd.f32 %v1657_v4, %v546_v10  ;;  %1244 = vmatprep.mubr.f32.mxu1 %v615_v6 }
 0x122   : > { %1245 = vmatmul.mubr.f32.gmra.mrb[16].mxu1 %v616_v8  ;;  %v618_v14 = vmax.f32 %v552_v9, 0.0 }
 0x123   : > { %v617_v12 = vmax.f32 %v547_v11, 0.0  ;;  %v1172_v13 = vpop.f32.mrb[24].mxu0 }
 0x124   : > { %v562_v15 = vadd.f32 %v1172_v13, %v1657_v4  ;;  %v556_v16 = vpop.f32.mrb[25].mxu0 }
 0x125   : > { %v557_v17 = vadd.f32 %v1657_v4, %v556_v16  ;;  %1247 = vmatprep.mubr.f32.mxu1 %v617_v12 }
 0x126   : > { %1248 = vmatmul.mubr.f32.gmra.mrb[18].mxu1 %v618_v14  ;;  %v620_v20 = vmax.f32 %v562_v15, 0.0 }
 0x127   : > { %v619_v18 = vmax.f32 %v557_v17, 0.0  ;;  %v1175_v19 = vpop.f32.mrb[26].mxu0 }
 0x128   : > { %v572_v21 = vadd.f32 %v1175_v19, %v1657_v4  ;;  %v566_v22 = vpop.f32.mrb[27].mxu0 }
 0x129   : > { %v567_v23 = vadd.f32 %v1657_v4, %v566_v22  ;;  %1250 = vmatprep.mubr.f32.mxu1 %v619_v18 }
 0x12a   : > { %1251 = vmatmul.mubr.f32.gmra.mrb[20].mxu1 %v620_v20  ;;  %v622_v26 = vmax.f32 %v572_v21, 0.0 }
 0x12b   : > { %v621_v24 = vmax.f32 %v567_v23, 0.0  ;;  %v1178_v25 = vpop.f32.mrb[28].mxu0 }
 0x12c   : > { %v582_v27 = vadd.f32 %v1178_v25, %v1657_v4  ;;  %v576_v28 = vpop.f32.mrb[29].mxu0 }
 0x12d   : > { %v577_v29 = vadd.f32 %v1657_v4, %v576_v28  ;;  %1253 = vmatprep.mubr.f32.mxu1 %v621_v24 }
 0x12e   : > { %1254 = vmatmul.mubr.f32.gmra.mrb[22].mxu1 %v622_v26  ;;  %v624_v32 = vmax.f32 %v582_v27, 0.0 }
 0x12f   : > { %v623_v30 = vmax.f32 %v577_v29, 0.0  ;;  %v1181_v31 = vpop.f32.mrb[30].mxu0 }
 0x130   : > { %v592_v33 = vadd.f32 %v1181_v31, %v1657_v4  ;;  %v586_v34 = vpop.f32.mrb[31].mxu0 }
 0x131   : > { %v587_v35 = vadd.f32 %v1657_v4, %v586_v34  ;;  %1256 = vmatprep.mubr.f32.mxu1 %v623_v30 }
 0x132   : > { %1257 = vmatmul.mubr.f32.gmra.mrb[24].mxu1 %v624_v32  ;;  %v626_v37 = vmax.f32 %v592_v33, 0.0 }
 0x133   : > { %v625_v36 = vmax.f32 %v587_v35, 0.0 }
 0x135   : > { %1259 = vmatprep.mubr.f32.mxu1 %v625_v36 }
 0x136   : > { %1260 = vmatmul.mubr.f32.gmra.mrb[26].mxu1 %v626_v37 }
 0x1cd   : > { %v1216_v39 = vpop.f32.mrb[32].mxu0 }
 0x1ce   : > { %v722_v40 = vadd.f32 %v1216_v39, %v1697_v38  ;;  %v716_v41 = vpop.f32.mrb[33].mxu0 }
 0x1cf   : > { %v717_v4 = vadd.f32 %v1697_v38, %v716_v41 }
 0x1d0   : > { %876 = vst [vmem:[%s1701_s17 + $0x8] sm:$0xff] %v722_v40 }
 0x1d1   : > { %875 = vst [vmem:[%s1701_s17] sm:$0xff] %v717_v4  ;;  %v1219_v42 = vpop.f32.mrb[34].mxu0 }
 0x1d2   : > { %v732_v43 = vadd.f32 %v1219_v42, %v1697_v38  ;;  %v726_v44 = vpop.f32.mrb[35].mxu0 }
 0x1d3   : > { %v727_v45 = vadd.f32 %v1697_v38, %v726_v44 }
 0x1d4   : > { %878 = vst [vmem:[%s1701_s17 + $0x18] sm:$0xff] %v732_v43 }
 0x1d5   : > { %877 = vst [vmem:[%s1701_s17 + $0x10] sm:$0xff] %v727_v45  ;;  %v1222_v46 = vpop.f32.mrb[0].mxu1 }
 0x1d6   : > { %v742_v47 = vadd.f32 %v1222_v46, %v1697_v38  ;;  %v736_v48 = vpop.f32.mrb[1].mxu1 }
 0x1d7   : > { %v737_v49 = vadd.f32 %v1697_v38, %v736_v48 }
 0x1d8   : > { %880 = vst [vmem:[%s1701_s17 + $0x28] sm:$0xff] %v742_v47 }
 0x1d9   : > { %879 = vst [vmem:[%s1701_s17 + $0x20] sm:$0xff] %v737_v49  ;;  %v1225_v50 = vpop.f32.mrb[2].mxu1 }
 0x1da   : > { %v752_v51 = vadd.f32 %v1225_v50, %v1697_v38  ;;  %v746_v52 = vpop.f32.mrb[3].mxu1 }
 0x1db   : > { %v747_v53 = vadd.f32 %v1697_v38, %v746_v52 }
 0x1dc   : > { %882 = vst [vmem:[%s1701_s17 + $0x38] sm:$0xff] %v752_v51 }
 0x1dd   : > { %881 = vst [vmem:[%s1701_s17 + $0x30] sm:$0xff] %v747_v53  ;;  %v1228_v54 = vpop.f32.mrb[4].mxu1 }
 0x1de   : > { %v762_v55 = vadd.f32 %v1228_v54, %v1697_v38  ;;  %v756_v56 = vpop.f32.mrb[5].mxu1 }
 0x1df   : > { %v757_v57 = vadd.f32 %v1697_v38, %v756_v56 }
 0x1e0   : > { %884 = vst [vmem:[%s1701_s17 + $0x48] sm:$0xff] %v762_v55 }
 0x1e1   : > { %883 = vst [vmem:[%s1701_s17 + $0x40] sm:$0xff] %v757_v57  ;;  %v1231_v58 = vpop.f32.mrb[6].mxu1 }
 0x1e2   : > { %v772_v59 = vadd.f32 %v1231_v58, %v1697_v38  ;;  %v766_v60 = vpop.f32.mrb[7].mxu1 }
 0x1e3   : > { %v767_v61 = vadd.f32 %v1697_v38, %v766_v60 }
 0x1e4   : > { %886 = vst [vmem:[%s1701_s17 + $0x58] sm:$0xff] %v772_v59 }
 0x1e5   : > { %885 = vst [vmem:[%s1701_s17 + $0x50] sm:$0xff] %v767_v61  ;;  %v1234_v62 = vpop.f32.mrb[8].mxu1 }
 0x1e6   : > { %v782_v63 = vadd.f32 %v1234_v62, %v1697_v38  ;;  %v776_v0 = vpop.f32.mrb[9].mxu1 }
 0x1e7   : > { %v777_v1 = vadd.f32 %v1697_v38, %v776_v0 }
 0x1e8   : > { %888 = vst [vmem:[%s1701_s17 + $0x68] sm:$0xff] %v782_v63 }
 0x1e9   : > { %887 = vst [vmem:[%s1701_s17 + $0x60] sm:$0xff] %v777_v1  ;;  %v1237_v2 = vpop.f32.mrb[10].mxu1 }
 0x1ea   : > { %v792_v3 = vadd.f32 %v1237_v2, %v1697_v38  ;;  %v786_v5 = vpop.f32.mrb[11].mxu1 }
 0x1eb   : > { %v787_v6 = vadd.f32 %v1697_v38, %v786_v5 }
 0x1ec   : > { %890 = vst [vmem:[%s1701_s17 + $0x78] sm:$0xff] %v792_v3 }
 0x1ed   : > { %889 = vst [vmem:[%s1701_s17 + $0x70] sm:$0xff] %v787_v6  ;;  %v1240_v7 = vpop.f32.mrb[12].mxu1 }
 0x1ee   : > { %v802_v8 = vadd.f32 %v1240_v7, %v1697_v38  ;;  %v796_v9 = vpop.f32.mrb[13].mxu1 }
 0x1ef   : > { %v797_v10 = vadd.f32 %v1697_v38, %v796_v9 }
 0x1f0   : > { %892 = vst [vmem:[%s1701_s17 + $0x88] sm:$0xff] %v802_v8 }
 0x1f1   : > { %891 = vst [vmem:[%s1701_s17 + $0x80] sm:$0xff] %v797_v10  ;;  %v1243_v11 = vpop.f32.mrb[14].mxu1 }
 0x1f2   : > { %v812_v12 = vadd.f32 %v1243_v11, %v1697_v38  ;;  %v806_v13 = vpop.f32.mrb[15].mxu1 }
 0x1f3   : > { %v807_v14 = vadd.f32 %v1697_v38, %v806_v13 }
 0x1f4   : > { %894 = vst [vmem:[%s1701_s17 + $0x98] sm:$0xff] %v812_v12 }
 0x1f5   : > { %893 = vst [vmem:[%s1701_s17 + $0x90] sm:$0xff] %v807_v14  ;;  %v1246_v15 = vpop.f32.mrb[16].mxu1 }
 0x1f6   : > { %v822_v16 = vadd.f32 %v1246_v15, %v1697_v38  ;;  %v816_v17 = vpop.f32.mrb[17].mxu1 }
 0x1f7   : > { %v817_v18 = vadd.f32 %v1697_v38, %v816_v17 }
 0x1f8   : > { %896 = vst [vmem:[%s1701_s17 + $0xa8] sm:$0xff] %v822_v16 }
 0x1f9   : > { %895 = vst [vmem:[%s1701_s17 + $0xa0] sm:$0xff] %v817_v18  ;;  %v1249_v19 = vpop.f32.mrb[18].mxu1 }
 0x1fa   : > { %v832_v20 = vadd.f32 %v1249_v19, %v1697_v38  ;;  %v826_v21 = vpop.f32.mrb[19].mxu1 }
 0x1fb   : > { %v827_v22 = vadd.f32 %v1697_v38, %v826_v21 }
 0x1fc   : > { %898 = vst [vmem:[%s1701_s17 + $0xb8] sm:$0xff] %v832_v20 }
 0x1fd   : > { %897 = vst [vmem:[%s1701_s17 + $0xb0] sm:$0xff] %v827_v22  ;;  %v1252_v23 = vpop.f32.mrb[20].mxu1 }
 0x1fe   : > { %v842_v24 = vadd.f32 %v1252_v23, %v1697_v38  ;;  %v836_v25 = vpop.f32.mrb[21].mxu1 }
 0x1ff   : > { %v837_v26 = vadd.f32 %v1697_v38, %v836_v25 }
 0x200   : > { %900 = vst [vmem:[%s1701_s17 + $0xc8] sm:$0xff] %v842_v24 }
 0x201   : > { %899 = vst [vmem:[%s1701_s17 + $0xc0] sm:$0xff] %v837_v26  ;;  %v1255_v27 = vpop.f32.mrb[22].mxu1 }
 0x202   : > { %v852_v28 = vadd.f32 %v1255_v27, %v1697_v38  ;;  %v846_v29 = vpop.f32.mrb[23].mxu1 }
 0x203   : > { %v847_v30 = vadd.f32 %v1697_v38, %v846_v29 }
 0x204   : > { %902 = vst [vmem:[%s1701_s17 + $0xd8] sm:$0xff] %v852_v28 }
 0x205   : > { %901 = vst [vmem:[%s1701_s17 + $0xd0] sm:$0xff] %v847_v30  ;;  %v1258_v31 = vpop.f32.mrb[24].mxu1 }
 0x206   : > { %v862_v32 = vadd.f32 %v1258_v31, %v1697_v38  ;;  %v856_v33 = vpop.f32.mrb[25].mxu1 }
 0x207   : > { %v857_v34 = vadd.f32 %v1697_v38, %v856_v33 }
 0x208   : > { %904 = vst [vmem:[%s1701_s17 + $0xe8] sm:$0xff] %v862_v32 }
 0x209   : > { %903 = vst [vmem:[%s1701_s17 + $0xe0] sm:$0xff] %v857_v34  ;;  %v1261_v35 = vpop.f32.mrb[26].mxu1 }
 0x20a   : > { %v872_v36 = vadd.f32 %v1261_v35, %v1697_v38  ;;  %v866_v37 = vpop.f32.mrb[27].mxu1 }
 0x20b   : > { %v867_v39 = vadd.f32 %v1697_v38, %v866_v37 }
 0x20c   : > { %906 = vst [vmem:[%s1701_s17 + $0xf8] sm:$0xff] %v872_v36 }
 0x20d   : > { %905 = vst [vmem:[%s1701_s17 + $0xf0] sm:$0xff] %v867_v39 }
 0x20e   : > { %1380 = shalt.err (!%p1377_p3)
}
 0x20f   : > { %s1381_s12 = scalar_lea.hbm %s1767_s6, 4096  ;;  %s1385_s14 = scalar_lea.hbm %s1822_s5, 16384 }
 0x210   : > { %p1382_p4 = scmp.ne.s32.totalorder %s1767_s6, %s1381_s12  ;;  %p1386_p9 = scmp.lt.u32.totalorder %s1767_s6, %s1822_s5 }
 0x211   : > { %p1387_p10 = scmp.lt.u32.totalorder %s1385_s14, %s1381_s12  ;;  %p1389_p12 = scmp.lt.u32.totalorder %s1381_s12, %s1767_s6 }
 0x212   : > { %p1383_p7 = pnand %p1382_p4, %p1502_p5 }
 0x213   : > { %p1388_p11 = por %p1387_p10, %p1386_p9 }
 0x214   : > { %p1384_p8 = pneg %p1383_p7 }
 0x215   : > { %p1390_p13 = por %p1389_p12, %p1388_p11 }
 0x217   : > { %p1391_p0 = pnand %p1390_p13, %p1384_p8 }
 0x219   : > { %1394 = shalt.err (!%p1391_p0)
}
 0x21a   : > { %s1432_s17 = smov 128   ;;  %s1433_s25 = smov 8  }
 0x21b   : > { %1326 = dma.vmem_to_hbm [thread:$0]  (%p1502_p5), %s1769_s11, 4096, %s1767_s6, %s1776_s22, %s1432_s17, %s1432_s17, %s1433_s25  }
 0x21c PF: > { %p1332_p1 = scmp.ge.s32.totalorder %s1429_s21, 2  ;;  %s936_s26 = sand.u32 1, %s1417_s18  }
 0x21d   : > { %s937_s30 = scalar_lea.sflag [#allocation3], %s936_s26 }
 0x21e   : > { %p1329_p2 = pnand %p1332_p1, %p1506_p6 }
 0x220   : > { %1412 = dma.done.wait (!%p1329_p2), %s937_s30, 4096  }
 0x221   : > { %1414 = vsyncadd (!%p1329_p2), %s937_s30, 4294963200  ;;  %p15_p3 = scmp.ge.s32.totalorder %s1489_s24, 6   ;;  %s1825_s18 = smov %s1421_s19 }
 0x222   : > { %s1826_s19 = smov %s1425_s20  ;;  %s1827_s20 = smov %s1500_s27 }
 0x223   : > { %s1828_s21 = smov %s1489_s24  ;;  %17 = sbr.rel (!%p15_p3) target bundleno = 3 (0x3), region = 75 }
 0x22a   :  { %942 = vsyncpa [#allocation3], 1 }
 0x22b   :  { %944 = vsyncpa [#allocation3 + $0x1], 1 }

</bundles_post_ra>
